<compile_context>
chip_gen: v7x
topology: tpu7x:2x2x1
jax: 0.10.0
libtpu: 0.0.40
codegen_flags: <defaults>
</compile_context>

<pallas_src>
import jax
import jax.numpy as jnp
import numpy as np
from jax import lax
from jax.experimental import pallas as pl
from jax.experimental.pallas import tpu as pltpu


def fire_kernel(x_ref, wsq_ref, bsq_ref, we1_ref, be1_ref, we3_ref, be3_ref,
                out_ref):
    # Per grid step (n, h):
    #   x_ref:   (1, H, W, Cin)  bf16  full input image of batch n (resident across h)
    #   wsq_ref: (Cin, Cs)       bf16  squeeze 1x1 weight
    #   bsq_ref: (1, Cs)         f32   squeeze bias
    #   we1_ref: (Cs, Ce1)       bf16  expand1x1 weight
    #   be1_ref: (1, Ce1)        f32   expand1x1 bias
    #   we3_ref: (9*Cs, Ce3)     bf16  expand3x3 weight, im2col-flattened (kh,kw,cin)
    #   be3_ref: (1, Ce3)        f32   expand3x3 bias
    #   out_ref: (1, TH, W, Ce1+Ce3) f32  fused output rows [h*TH, h*TH+TH)
    H = x_ref.shape[1]
    W = x_ref.shape[2]
    Cin = x_ref.shape[3]
    Cs = wsq_ref.shape[1]
    Ce1 = we1_ref.shape[1]
    Ce3 = we3_ref.shape[1]
    TH = out_ref.shape[1]

    row0 = pl.multiple_of(pl.program_id(1) * TH, TH)

    # ---- gather TH+2 input rows (1-row halo above/below, clamped at edges) ----
    up = jnp.maximum(row0 - 1, 0)
    dn = jnp.minimum(row0 + TH, H - 1)
    x_up = x_ref[0, pl.ds(up, 1)]         # (1, W, Cin)
    x_mid = x_ref[0, pl.ds(row0, TH)]     # (TH, W, Cin)
    x_dn = x_ref[0, pl.ds(dn, 1)]         # (1, W, Cin)
    x_halo = jnp.concatenate([x_up, x_mid, x_dn], axis=0)   # (TH+2, W, Cin)

    # ---- squeeze 1x1 conv + ReLU: one matmul over all TH+2 rows, f32 accum ----
    s = jnp.dot(x_halo.reshape((TH + 2) * W, Cin), wsq_ref[...],
                preferred_element_type=jnp.float32)
    s = jnp.maximum(s + bsq_ref[...], 0.0)
    s = s.reshape(TH + 2, W, Cs)

    # Zero the halo rows that fall outside the image (conv zero padding applies
    # to the squeeze *output*, so this must happen after bias+ReLU).
    grow = lax.broadcasted_iota(jnp.int32, (TH + 2, W, Cs), 0) + (row0 - 1)
    valid = jnp.logical_and(grow >= 0, grow < H).astype(s.dtype)
    s_bf = (s * valid).astype(jnp.bfloat16)

    # Zero-pad the W dimension by one column on each side -> (TH+2, W+2, Cs).
    zcol = jnp.zeros((TH + 2, 1, Cs), jnp.bfloat16)
    s_pad = jnp.concatenate([zcol, s_bf, zcol], axis=1)

    # ---- im2col: one (TH*W, 9*Cs) patch matrix -> single deep-K matmul ----
    pieces = [s_pad[dy:dy + TH, dx:dx + W, :]
              for dy in range(3) for dx in range(3)]
    patch = jnp.concatenate(pieces, axis=-1).reshape(TH * W, 9 * Cs)

    # ---- expand1x1 + ReLU (center tap == un-shifted squeeze output) ----
    center = pieces[4].reshape(TH * W, Cs)
    e1 = jnp.dot(center, we1_ref[...], preferred_element_type=jnp.float32)
    e1 = jnp.maximum(e1 + be1_ref[...], 0.0)

    # ---- expand3x3 + ReLU ----
    e3 = jnp.dot(patch, we3_ref[...], preferred_element_type=jnp.float32)
    e3 = jnp.maximum(e3 + be3_ref[...], 0.0)

    # ---- fused output write: channel-concat happens here, not in the wrapper ----
    out_ref[0, :, :, :Ce1] = e1.reshape(TH, W, Ce1).astype(out_ref.dtype)
    out_ref[0, :, :, Ce1:] = e3.reshape(TH, W, Ce3).astype(out_ref.dtype)


def _pick_row_tile(H, W):
    """Row-tile height: ~128 output rows (TH*W) per grid step, dividing H."""
    th = min(H, max(1, 128 // max(W, 1)))
    while H % th:
        th -= 1
    return th


def fire_forward_nhwc(x_nhwc, params):
    """Fire forward on NHWC input. Returns (N, H, W, Ce1+Ce3) float32."""
    wsq, bsq, we1, be1, we3, be3 = params
    N, H, W, Cin = x_nhwc.shape
    Cs = wsq.shape[1]
    Ce1 = we1.shape[1]
    Ce3 = we3.shape[3]
    Ctot = Ce1 + Ce3
    TH = _pick_row_tile(H, W)

    # bf16 MXU operands; f32 accumulation happens inside the kernel.
    xb = x_nhwc.astype(jnp.bfloat16)
    wsq_b = wsq.astype(jnp.bfloat16)
    we1_b = we1.astype(jnp.bfloat16)
    we3_b = we3.reshape(9 * Cs, Ce3).astype(jnp.bfloat16)   # im2col weight layout

    def full(a):
        return pl.BlockSpec(a.shape, lambda n, h: (0,) * a.ndim)

    out = pl.pallas_call(
        fire_kernel,
        out_shape=jax.ShapeDtypeStruct((N, H, W, Ctot), jnp.float32),
        grid_spec=pltpu.PrefetchScalarGridSpec(
            num_scalar_prefetch=0,
            grid=(N, H // TH),
            in_specs=[
                # full image per batch element, resident across the h-tile axis
                pl.BlockSpec((1, H, W, Cin), lambda n, h: (n, 0, 0, 0)),
                full(wsq_b),
                full(bsq),
                full(we1_b),
                full(be1),
                full(we3_b),
                full(be3),
            ],
            out_specs=pl.BlockSpec((1, TH, W, Ctot), lambda n, h: (n, h, 0, 0)),
        ),
        compiler_params=pltpu.CompilerParams(
            dimension_semantics=("parallel", "parallel"),
            # Explicit VMEM budget (tiny here): safe on v7x's 64 MiB as well.
            vmem_limit_bytes=32 * 1024 * 1024,
        ),
    )(xb, wsq_b, bsq, we1_b, be1, we3_b, be3)
    return out


def fire_forward(x_nchw, params):
    """NCHW adapter (PyTorch parity). Real pipelines should stay NHWC and call
    fire_forward_nhwc directly to keep the transposes off the hot path."""
    x = jnp.transpose(x_nchw, (0, 2, 3, 1))
    out = fire_forward_nhwc(x, params)
    return jnp.transpose(out, (0, 3, 1, 2))


def init_fire_params(key, inplanes, squeeze_planes, expand1x1_planes,
                     expand3x3_planes):
    """Deterministic synthetic params in kernel-friendly layouts (f32 master)."""
    k1, k2, k3, k4, k5, k6 = jax.random.split(key, 6)
    # squeeze: torch weight (Cs, Cin, 1, 1) -> (Cin, Cs)
    wsq = jax.random.normal(k1, (inplanes, squeeze_planes), jnp.float32) * 0.1
    bsq = jax.random.normal(k2, (1, squeeze_planes), jnp.float32) * 0.1
    # expand1x1: torch weight (Ce1, Cs, 1, 1) -> (Cs, Ce1)
    we1 = jax.random.normal(k3, (squeeze_planes, expand1x1_planes), jnp.float32) * 0.1
    be1 = jax.random.normal(k4, (1, expand1x1_planes), jnp.float32) * 0.1
    # expand3x3: torch weight (Ce3, Cs, 3, 3) -> (3, 3, Cs, Ce3) == (kh, kw, in, out)
    we3 = jax.random.normal(k5, (3, 3, squeeze_planes, expand3x3_planes), jnp.float32) * 0.1
    be3 = jax.random.normal(k6, (1, expand3x3_planes), jnp.float32) * 0.1
    return wsq, bsq, we1, be1, we3, be3


def fire_reference(x_nchw, params):
    """Pure-JAX (XLA conv, f32) reference in NCHW matching the PyTorch module."""
    wsq, bsq, we1, be1, we3, be3 = params
    wsq_oihw = jnp.transpose(wsq, (1, 0))[:, :, None, None]
    we1_oihw = jnp.transpose(we1, (1, 0))[:, :, None, None]
    we3_oihw = jnp.transpose(we3, (3, 2, 0, 1))

    def conv(x, w, b, pad):
        y = jax.lax.conv_general_dilated(
            x, w, window_strides=(1, 1), padding=[(pad, pad), (pad, pad)],
            dimension_numbers=("NCHW", "OIHW", "NCHW"))
        return y + b.reshape(1, -1, 1, 1)

    s = jax.nn.relu(conv(x_nchw, wsq_oihw, bsq, 0))
    e1 = jax.nn.relu(conv(s, we1_oihw, be1, 0))
    e3 = jax.nn.relu(conv(s, we3_oihw, be3, 1))
    return jnp.concatenate([e1, e3], axis=1)


if __name__ == "__main__":
    key = jax.random.PRNGKey(0)
    kx, kp = jax.random.split(key)

    N, Cin, H, W = 2, 4, 16, 16
    squeeze_planes, expand1x1_planes, expand3x3_planes = 4, 8, 8

    x = jax.random.normal(kx, (N, Cin, H, W), jnp.float32)
    params = init_fire_params(kp, Cin, squeeze_planes,
                              expand1x1_planes, expand3x3_planes)

    out = jax.block_until_ready(fire_forward(x, params))
    assert out.shape == (N, expand1x1_planes + expand3x3_planes, H, W), out.shape

    ref = jax.block_until_ready(fire_reference(x, params))
    # bf16 MXU operands vs f32 reference -> slightly looser tolerance.
    assert np.allclose(np.asarray(out), np.asarray(ref), rtol=2e-2, atol=2e-2), (
        "mismatch vs reference")

    print("KERNEL_OK")
</pallas_src>

<mosaic_0001>
module attributes {stable_mosaic.version = 11 : i64} {
  func.func @fire_kernel(%arg0: i32, %arg1: i32, %arg2: memref<1x16x16x4xbf16, #tpu.memory_space<vmem>>, %arg3: memref<4x4xbf16, #tpu.memory_space<vmem>>, %arg4: memref<1x4xf32, #tpu.memory_space<vmem>>, %arg5: memref<4x8xbf16, #tpu.memory_space<vmem>>, %arg6: memref<1x8xf32, #tpu.memory_space<vmem>>, %arg7: memref<36x8xbf16, #tpu.memory_space<vmem>>, %arg8: memref<1x8xf32, #tpu.memory_space<vmem>>, %arg9: memref<1x8x16x16xf32, #tpu.memory_space<vmem>>) attributes {dimension_semantics = [#tpu.dimension_semantics<parallel>, #tpu.dimension_semantics<parallel>], iteration_bounds = array<i64: 2, 2>, scalar_prefetch = 0 : i64, scratch_operands = 0 : i64, tpu.core_type = #tpu.core_type<tc>, window_params = [{transform_indices = @transform_0, window_bounds = array<i64: 1, 16, 16, 4>}, {pipeline_mode = #tpu.pipeline_mode<synchronous>, transform_indices = @transform_1, window_bounds = array<i64: 4, 4>}, {pipeline_mode = #tpu.pipeline_mode<synchronous>, transform_indices = @transform_2, window_bounds = array<i64: 1, 4>}, {pipeline_mode = #tpu.pipeline_mode<synchronous>, transform_indices = @transform_3, window_bounds = array<i64: 4, 8>}, {pipeline_mode = #tpu.pipeline_mode<synchronous>, transform_indices = @transform_4, window_bounds = array<i64: 1, 8>}, {pipeline_mode = #tpu.pipeline_mode<synchronous>, transform_indices = @transform_5, window_bounds = array<i64: 36, 8>}, {pipeline_mode = #tpu.pipeline_mode<synchronous>, transform_indices = @transform_6, window_bounds = array<i64: 1, 8>}, {transform_indices = @transform_7, window_bounds = array<i64: 1, 8, 16, 16>}]} {
    %c8_i32 = arith.constant 8 : i32
    %0 = arith.muli %arg1, %c8_i32 : i32
    %1 = tpu.assume_multiple %0, 8 : i32
    %c1_i32 = arith.constant 1 : i32
    %2 = arith.subi %1, %c1_i32 : i32
    %c0_i32 = arith.constant 0 : i32
    %3 = arith.maxsi %2, %c0_i32 : i32
    %c8_i32_0 = arith.constant 8 : i32
    %4 = arith.addi %1, %c8_i32_0 : i32
    %c15_i32 = arith.constant 15 : i32
    %5 = arith.minsi %4, %c15_i32 : i32
    %c0 = arith.constant 0 : index
    %6 = arith.index_cast %3 : i32 to index
    %c0_1 = arith.constant 0 : index
    %c0_2 = arith.constant 0 : index
    %7 = vector.load %arg2[%c0, %6, %c0_1, %c0_2] : memref<1x16x16x4xbf16, #tpu.memory_space<vmem>>, vector<1x1x16x4xbf16>
    %8 = vector.shape_cast %7 : vector<1x1x16x4xbf16> to vector<1x16x4xbf16>
    %c0_3 = arith.constant 0 : index
    %9 = arith.index_cast %1 : i32 to index
    %c0_4 = arith.constant 0 : index
    %c0_5 = arith.constant 0 : index
    %10 = vector.load %arg2[%c0_3, %9, %c0_4, %c0_5] : memref<1x16x16x4xbf16, #tpu.memory_space<vmem>>, vector<1x8x16x4xbf16>
    %11 = vector.shape_cast %10 : vector<1x8x16x4xbf16> to vector<8x16x4xbf16>
    %c0_6 = arith.constant 0 : index
    %12 = arith.index_cast %5 : i32 to index
    %c0_7 = arith.constant 0 : index
    %c0_8 = arith.constant 0 : index
    %13 = vector.load %arg2[%c0_6, %12, %c0_7, %c0_8] : memref<1x16x16x4xbf16, #tpu.memory_space<vmem>>, vector<1x1x16x4xbf16>
    %14 = vector.shape_cast %13 : vector<1x1x16x4xbf16> to vector<1x16x4xbf16>
    %15 = tpu.concatenate %8, %11, %14 in 0 : vector<1x16x4xbf16>, vector<8x16x4xbf16>, vector<1x16x4xbf16> -> vector<10x16x4xbf16>
    %16 = vector.shape_cast %15 : vector<10x16x4xbf16> to vector<160x4xbf16>
    %c0_9 = arith.constant 0 : index
    %c0_10 = arith.constant 0 : index
    %17 = vector.load %arg3[%c0_9, %c0_10] : memref<4x4xbf16, #tpu.memory_space<vmem>>, vector<4x4xbf16>
    %cst = arith.constant dense<0.000000e+00> : vector<160x4xf32>
    %18 = tpu.matmul %16, %17, %cst {dimension_numbers = #tpu.dot_dimension_numbers<[1], [0], [0], [1], [0, 0, 1, 1], [], []>} : vector<160x4xbf16>, vector<4x4xbf16>, vector<160x4xf32> -> vector<160x4xf32>
    %c0_11 = arith.constant 0 : index
    %c0_12 = arith.constant 0 : index
    %19 = vector.load %arg4[%c0_11, %c0_12] : memref<1x4xf32, #tpu.memory_space<vmem>>, vector<1x4xf32>
    %20 = vector.broadcast %19 : vector<1x4xf32> to vector<160x4xf32>
    %21 = arith.addf %18, %20 : vector<160x4xf32>
    %cst_13 = arith.constant 0.000000e+00 : f32
    %22 = vector.broadcast %cst_13 : f32 to vector<160x4xf32>
    %23 = arith.maximumf %21, %22 : vector<160x4xf32>
    %24 = vector.shape_cast %23 : vector<160x4xf32> to vector<10x16x4xf32>
    %25 = tpu.iota {dimensions = array<i32: 0>} : vector<10x16x4xi32>
    %c1_i32_14 = arith.constant 1 : i32
    %26 = arith.subi %1, %c1_i32_14 : i32
    %27 = vector.broadcast %26 : i32 to vector<10x16x4xi32>
    %28 = arith.addi %25, %27 : vector<10x16x4xi32>
    %c0_i32_15 = arith.constant 0 : i32
    %29 = vector.broadcast %c0_i32_15 : i32 to vector<10x16x4xi32>
    %30 = arith.cmpi sge, %28, %29 : vector<10x16x4xi32>
    %c16_i32 = arith.constant 16 : i32
    %31 = vector.broadcast %c16_i32 : i32 to vector<10x16x4xi32>
    %32 = arith.cmpi slt, %28, %31 : vector<10x16x4xi32>
    %33 = arith.andi %30, %32 : vector<10x16x4xi1>
    %34 = arith.extui %33 : vector<10x16x4xi1> to vector<10x16x4xi32>
    %35 = arith.sitofp %34 : vector<10x16x4xi32> to vector<10x16x4xf32>
    %36 = arith.mulf %24, %35 : vector<10x16x4xf32>
    %37 = arith.truncf %36 : vector<10x16x4xf32> to vector<10x16x4xbf16>
    %cst_16 = arith.constant 0.000000e+00 : bf16
    %38 = vector.broadcast %cst_16 : bf16 to vector<10x1x4xbf16>
    %39 = tpu.concatenate %38, %37, %38 in 1 : vector<10x1x4xbf16>, vector<10x16x4xbf16>, vector<10x1x4xbf16> -> vector<10x18x4xbf16>
    %40 = vector.extract_strided_slice %39 {offsets = [0, 0, 0], sizes = [8, 16, 4], strides = [1, 1, 1]} : vector<10x18x4xbf16> to vector<8x16x4xbf16>
    %41 = vector.extract_strided_slice %39 {offsets = [0, 1, 0], sizes = [8, 16, 4], strides = [1, 1, 1]} : vector<10x18x4xbf16> to vector<8x16x4xbf16>
    %42 = vector.extract_strided_slice %39 {offsets = [0, 2, 0], sizes = [8, 16, 4], strides = [1, 1, 1]} : vector<10x18x4xbf16> to vector<8x16x4xbf16>
    %43 = vector.extract_strided_slice %39 {offsets = [1, 0, 0], sizes = [8, 16, 4], strides = [1, 1, 1]} : vector<10x18x4xbf16> to vector<8x16x4xbf16>
    %44 = vector.extract_strided_slice %39 {offsets = [1, 1, 0], sizes = [8, 16, 4], strides = [1, 1, 1]} : vector<10x18x4xbf16> to vector<8x16x4xbf16>
    %45 = vector.extract_strided_slice %39 {offsets = [1, 2, 0], sizes = [8, 16, 4], strides = [1, 1, 1]} : vector<10x18x4xbf16> to vector<8x16x4xbf16>
    %46 = vector.extract_strided_slice %39 {offsets = [2, 0, 0], sizes = [8, 16, 4], strides = [1, 1, 1]} : vector<10x18x4xbf16> to vector<8x16x4xbf16>
    %47 = vector.extract_strided_slice %39 {offsets = [2, 1, 0], sizes = [8, 16, 4], strides = [1, 1, 1]} : vector<10x18x4xbf16> to vector<8x16x4xbf16>
    %48 = vector.extract_strided_slice %39 {offsets = [2, 2, 0], sizes = [8, 16, 4], strides = [1, 1, 1]} : vector<10x18x4xbf16> to vector<8x16x4xbf16>
    %49 = tpu.concatenate %40, %41, %42, %43, %44, %45, %46, %47, %48 in 2 : vector<8x16x4xbf16>, vector<8x16x4xbf16>, vector<8x16x4xbf16>, vector<8x16x4xbf16>, vector<8x16x4xbf16>, vector<8x16x4xbf16>, vector<8x16x4xbf16>, vector<8x16x4xbf16>, vector<8x16x4xbf16> -> vector<8x16x36xbf16>
    %50 = vector.shape_cast %49 : vector<8x16x36xbf16> to vector<128x36xbf16>
    %51 = vector.shape_cast %44 : vector<8x16x4xbf16> to vector<128x4xbf16>
    %c0_17 = arith.constant 0 : index
    %c0_18 = arith.constant 0 : index
    %52 = vector.load %arg5[%c0_17, %c0_18] : memref<4x8xbf16, #tpu.memory_space<vmem>>, vector<4x8xbf16>
    %cst_19 = arith.constant dense<0.000000e+00> : vector<128x8xf32>
    %53 = tpu.matmul %51, %52, %cst_19 {dimension_numbers = #tpu.dot_dimension_numbers<[1], [0], [0], [1], [0, 0, 1, 1], [], []>} : vector<128x4xbf16>, vector<4x8xbf16>, vector<128x8xf32> -> vector<128x8xf32>
    %c0_20 = arith.constant 0 : index
    %c0_21 = arith.constant 0 : index
    %54 = vector.load %arg6[%c0_20, %c0_21] : memref<1x8xf32, #tpu.memory_space<vmem>>, vector<1x8xf32>
    %55 = vector.broadcast %54 : vector<1x8xf32> to vector<128x8xf32>
    %56 = arith.addf %53, %55 : vector<128x8xf32>
    %cst_22 = arith.constant 0.000000e+00 : f32
    %57 = vector.broadcast %cst_22 : f32 to vector<128x8xf32>
    %58 = arith.maximumf %56, %57 : vector<128x8xf32>
    %c0_23 = arith.constant 0 : index
    %c0_24 = arith.constant 0 : index
    %59 = vector.load %arg7[%c0_23, %c0_24] : memref<36x8xbf16, #tpu.memory_space<vmem>>, vector<36x8xbf16>
    %cst_25 = arith.constant dense<0.000000e+00> : vector<128x8xf32>
    %60 = tpu.matmul %50, %59, %cst_25 {dimension_numbers = #tpu.dot_dimension_numbers<[1], [0], [0], [1], [0, 0, 1, 1], [], []>} : vector<128x36xbf16>, vector<36x8xbf16>, vector<128x8xf32> -> vector<128x8xf32>
    %c0_26 = arith.constant 0 : index
    %c0_27 = arith.constant 0 : index
    %61 = vector.load %arg8[%c0_26, %c0_27] : memref<1x8xf32, #tpu.memory_space<vmem>>, vector<1x8xf32>
    %62 = vector.broadcast %61 : vector<1x8xf32> to vector<128x8xf32>
    %63 = arith.addf %60, %62 : vector<128x8xf32>
    %cst_28 = arith.constant 0.000000e+00 : f32
    %64 = vector.broadcast %cst_28 : f32 to vector<128x8xf32>
    %65 = arith.maximumf %63, %64 : vector<128x8xf32>
    %66 = vector.shape_cast %58 : vector<128x8xf32> to vector<8x16x8xf32>
    %c0_29 = arith.constant 0 : index
    %c0_30 = arith.constant 0 : index
    %c0_31 = arith.constant 0 : index
    %c0_32 = arith.constant 0 : index
    %67 = vector.load %arg9[%c0_29, %c0_30, %c0_31, %c0_32] : memref<1x8x16x16xf32, #tpu.memory_space<vmem>>, vector<1x8x16x8xf32>
    %68 = vector.shape_cast %67 : vector<1x8x16x8xf32> to vector<8x16x8xf32>
    %69 = vector.shape_cast %66 : vector<8x16x8xf32> to vector<1x8x16x8xf32>
    tpu.vector_store %arg9[%c0_29, %c0_30, %c0_31, %c0_32], %69 {strides = array<i32>} : memref<1x8x16x16xf32, #tpu.memory_space<vmem>>, vector<1x8x16x8xf32>,
    %70 = vector.shape_cast %65 : vector<128x8xf32> to vector<8x16x8xf32>
    %c0_33 = arith.constant 0 : index
    %c0_34 = arith.constant 0 : index
    %c0_35 = arith.constant 0 : index
    %c8 = arith.constant 8 : index
    %71 = vector.load %arg9[%c0_33, %c0_34, %c0_35, %c8] : memref<1x8x16x16xf32, #tpu.memory_space<vmem>>, vector<1x8x16x8xf32>
    %72 = vector.shape_cast %71 : vector<1x8x16x8xf32> to vector<8x16x8xf32>
    %73 = vector.shape_cast %70 : vector<8x16x8xf32> to vector<1x8x16x8xf32>
    tpu.vector_store %arg9[%c0_33, %c0_34, %c0_35, %c8], %73 {strides = array<i32>} : memref<1x8x16x16xf32, #tpu.memory_space<vmem>>, vector<1x8x16x8xf32>,
    return
  }
  func.func @transform_0(%arg0: i32, %arg1: i32) -> (i32, i32, i32, i32) {
    %c0_i32 = arith.constant 0 : i32
    %c0_i32_0 = arith.constant 0 : i32
    %c0_i32_1 = arith.constant 0 : i32
    %c0_i32_2 = arith.constant 0 : i32
    return %arg0, %c0_i32, %c0_i32_0, %c0_i32_1 : i32, i32, i32, i32
  }
  func.func @transform_1(%arg0: i32, %arg1: i32) -> (i32, i32) {
    %c0_i32 = arith.constant 0 : i32
    %c0_i32_0 = arith.constant 0 : i32
    %c0_i32_1 = arith.constant 0 : i32
    return %c0_i32, %c0_i32_0 : i32, i32
  }
  func.func @transform_2(%arg0: i32, %arg1: i32) -> (i32, i32) {
    %c0_i32 = arith.constant 0 : i32
    %c0_i32_0 = arith.constant 0 : i32
    %c0_i32_1 = arith.constant 0 : i32
    return %c0_i32, %c0_i32_0 : i32, i32
  }
  func.func @transform_3(%arg0: i32, %arg1: i32) -> (i32, i32) {
    %c0_i32 = arith.constant 0 : i32
    %c0_i32_0 = arith.constant 0 : i32
    %c0_i32_1 = arith.constant 0 : i32
    return %c0_i32, %c0_i32_0 : i32, i32
  }
  func.func @transform_4(%arg0: i32, %arg1: i32) -> (i32, i32) {
    %c0_i32 = arith.constant 0 : i32
    %c0_i32_0 = arith.constant 0 : i32
    %c0_i32_1 = arith.constant 0 : i32
    return %c0_i32, %c0_i32_0 : i32, i32
  }
  func.func @transform_5(%arg0: i32, %arg1: i32) -> (i32, i32) {
    %c0_i32 = arith.constant 0 : i32
    %c0_i32_0 = arith.constant 0 : i32
    %c0_i32_1 = arith.constant 0 : i32
    return %c0_i32, %c0_i32_0 : i32, i32
  }
  func.func @transform_6(%arg0: i32, %arg1: i32) -> (i32, i32) {
    %c0_i32 = arith.constant 0 : i32
    %c0_i32_0 = arith.constant 0 : i32
    %c0_i32_1 = arith.constant 0 : i32
    return %c0_i32, %c0_i32_0 : i32, i32
  }
  func.func @transform_7(%arg0: i32, %arg1: i32) -> (i32, i32, i32, i32) {
    %c0_i32 = arith.constant 0 : i32
    %c0_i32_0 = arith.constant 0 : i32
    %c0_i32_1 = arith.constant 0 : i32
    return %arg0, %arg1, %c0_i32, %c0_i32_0 : i32, i32, i32, i32
  }
}

</mosaic_0001>

<bundles_post_ra>
// kernel: tpu_custom_call.1
= control target key start
LH: loop header
LB: loop body
LE: loop exit
PB: predicated region body
PF: predicated region fallthrough
CT: control target
= control target key end

     0   :  { %s2888_s0 = inlined_call_operand.vmem [shape: bf16[2,16,16,4], index: 0, kind: input, shape index: {}]   ;;  %s2889_s1 = inlined_call_operand.vmem [shape: bf16[4,4], index: 1, kind: input, shape index: {}]   ;;  %s2890_s2 = inlined_call_operand.vmem [shape: f32[1,4], index: 2, kind: input, shape index: {}]   ;;  %s2891_s3 = inlined_call_operand.vmem [shape: bf16[4,8], index: 3, kind: input, shape index: {}]   ;;  %s2892_s4 = inlined_call_operand.vmem [shape: f32[1,8], index: 4, kind: input, shape index: {}]   ;;  %s2893_s5 = inlined_call_operand.vmem [shape: bf16[36,8], index: 5, kind: input, shape index: {}]   ;;  %s2894_s6 = inlined_call_operand.vmem [shape: f32[1,8], index: 6, kind: input, shape index: {}]   ;;  %s2895_s7 = inlined_call_operand.hbm [shape: f32[2,16,16,16], index: 7, kind: output, shape index: {}]  }
   0x1   :  { %2898 = sst [smem:[#allocation7_spill]] %s2889_s1 }
   0x2   :  { %12 = vsyncpa [#allocation3], 0 }
   0x3   :  { %14 = vsyncpa [#allocation3 + $0x1], 0  ;;  %s2118_s24 = smov 0   ;;  %s2120_s25 = smov 0  }
   0x4   :  { %s2122_s26 = smov 0   ;;  %s2124_s27 = smov 0  }
   0x5   :  { %s2126_s28 = smov 0   ;;  %s2128_s29 = smov 0  }
   0x6   :  { %s2130_s30 = smov 0   ;;  %s2132_s8 = smov 0  }
   0x7 LB: > { %s1697_s9 = sadd.s32 4294967295, %s2065_s8   ;;  %s1698_s10 = sadd.s32 4294967294, %s2065_s8   ;;  %s2065_s8 = sphi %s2132_s8, %s20_s8   ;;  %s2061_s30 = sphi %s2130_s30, %s2926_s30   ;;  %s2057_s29 = sphi %s2128_s29, %s2925_s29   ;;  %s2053_s28 = sphi %s2126_s28, %s2924_s28   ;;  %s2049_s27 = sphi %s2124_s27, %s2923_s27   ;;  %s2045_s26 = sphi %s2122_s26, %s2922_s26   ;;  %s2041_s25 = sphi %s2120_s25, %s2921_s25   ;;  %s2037_s24 = sphi %s2118_s24, %s2920_s24  }
   0x8   : > { %s29_s11 = sadd.s32 1, %s2057_s29  ;;  %s32_s12 = sadd.s32 1, %s2061_s30 }
   0x9   : > { %p30_p0 = scmp.ge.s32.totalorder %s29_s11, 2  ;;  %p203_p1 = scmp.ne.s32.totalorder %s2045_s26, %s2041_s25 }
   0xa   : > { %p204_p2 = scmp.eq.s32.totalorder %s1697_s9, 3  ;;  %p209_p5 = scmp.ne.s32.totalorder %s2041_s25, %s2037_s24 }
   0xb   : > { %s2928_s11 = smov (%p30_p0, %s29_s11), 0  ;;  %s2930_s12 = smov (!%p30_p0, %s32_s12), %s2061_s30 }
   0xc   : > { %2899 = sst [smem:[#allocation5_spill]] %s2928_s11  ;;  %s189_s13 = ssub.s32 %s2057_s29, %s2928_s11 }
   0xd   : > { %p2169_p3 = por %p204_p2, %p203_p1  ;;  %p34_p4 = scmp.ge.s32.totalorder %s2930_s12, 2 }
   0xe   : > { %p210_p6 = scmp.eq.s32.totalorder %s1698_s10, 3  ;;  %p1701_p7 = scmp.ge.s32.totalorder %s2065_s8, 1 }
   0xf   : > { %s2932_s12 = smov (%p34_p4, %s2930_s12), 0  ;;  %p254_p9 = scmp.lt.s32.totalorder %s2065_s8, 5 }
  0x10   : > { %2901 = sst [smem:[#allocation6_spill]] %s2932_s12  ;;  %p2178_p8 = por %p210_p6, %p209_p5 }
  0x11   : > { %s188_s16 = ssub.s32 %s2061_s30, %s2932_s12  ;;  %s193_s17 = sadd.s32 1, %s2045_s26 }
  0x12   : > { %s190_s18 = sor.u32 %s189_s13, %s188_s16  ;;  %p255_p10 = pnand %p1701_p7, %p254_p9 }
  0x13   : > { %p191_p11 = scmp.eq.s32.totalorder %s190_s18, 0  ;;  %s2903_s1 = sld [smem:[#allocation7_spill]] (!%p255_p10)  ;;  %vm418_vm0 = vcmask (!%p255_p10), 1041408   ;;  %vm387_vm1 = vcmask (!%p255_p10), 31744   ;;  %v1193_v12 = vld [vmem:[%s2891_s3] sm:$0x3] (!%p255_p10) }
  0x14   : > { %258 = sbr.rel (%p255_p10) target bundleno = 860 (0x35c), region = 48  ;;  %p286_p12 = scmp.lt.s32.totalorder (!%p255_p10), %s2053_s28, 1  ;;  %v1226_v13 = vsel (!%p255_p10), %vm418_vm0, %v1193_v12, 0  ;;  %1875 = vmatprep.subr.msk.bf16.mxu1 (!%p255_p10), %vm418_vm0, %v1193_v12  ;;  %v2231_v17 = vld [vmem:[%s2890_s2] ss:$0 sm:$0xff] (!%p255_p10)  ;;  %v2067_v29 = vmov (!%p255_p10), 0.0  }
  0x15   : > { %s2187_s19 = scalar_select %p191_p11, %s2045_s26, %s193_s17  }
  0x16   : > { %s1705_s22 = sshll.u32 (!%p255_p10), %s2049_s27, 3  ;;  %s1775_s20 = sshll.u32 (!%p255_p10), %s2049_s27, 6  ;;  %1872 = vmatpush3.bf16.msra.mxu1 (!%p255_p10), %v1226_v13 }
  0x17   : > { %s2196_s23 = sadd.s32 (!%p255_p10), 4294967295, %s1705_s22  ;;  %s297_s9 = sadd.s32 (!%p255_p10), 8, %s1705_s22 }
  0x18   : > { %p295_p13 = scmp.gt.s32.totalorder (!%p255_p10), %s2196_s23, 0  ;;  %p298_p0 = scmp.lt.s32.totalorder (!%p255_p10), %s297_s9, 15  ;;  %v2222_v14 = vstv (!%p255_p10), %s2196_s23 }
  0x19   : > { %v329_v0 = vld [vmem:[%s2903_s1] sm:$0x3] (!%p255_p10)  ;;  %v556_v15 = vadd.s32 (!%p255_p10), 1, %v2222_v14  ;;  %vm565_vm4 = vcmp.ge.s32.totalorder (!%p255_p10), %v2222_v14, 0  ;;  %vm575_vm5 = vcmp.lt.s32.totalorder (!%p255_p10), %v2222_v14, 16  ;;  %v558_v16 = vadd.s32 (!%p255_p10), 3, %v2222_v14 }
  0x1a   : > { %1873 = vmatprep.subr.msk.bf16.mxu0 (!%p255_p10), %vm418_vm0, %v329_v0  ;;  %v420_v1 = vsel (!%p255_p10), %vm418_vm0, %v329_v0, 0  ;;  %v557_v18 = vadd.s32 (!%p255_p10), 2, %v2222_v14  ;;  %vm585_vm7 = vmand (!%p255_p10), %vm565_vm4, %vm575_vm5  ;;  %v560_v21 = vadd.s32 (!%p255_p10), 5, %v2222_v14  ;;  %v559_v24 = vadd.s32 (!%p255_p10), 4, %v2222_v14  ;;  %s2070_s16 = smov (!%p255_p10), 20   ;;  %s2071_s17 = smov (!%p255_p10), 4  }
  0x1b   : > { %1810 = vmatpush3.bf16.msra.mxu0 %v420_v1  ;;  %s287_s10 = scalar_select %p286_p12, %s2053_s28, 1  ;;  %vm566_vm2 = vcmp.ge.s32.totalorder %v556_v15, 0  ;;  %vm576_vm3 = vcmp.lt.s32.totalorder %v556_v15, 16  ;;  %vm568_vm8 = vcmp.ge.s32.totalorder %v558_v16, 0  ;;  %vm578_vm9 = vcmp.lt.s32.totalorder %v558_v16, 16 }
  0x1c   : > { %s296_s21 = scalar_select %p295_p13, %s2196_s23, 0  ;;  %1874 = vmatprep.subr.msk.bf16.mxu0 %vm418_vm0, %v1193_v12  ;;  %vm2234_vm6 = vmand %vm566_vm2, %vm576_vm3  ;;  %vm567_vm10 = vcmp.ge.s32.totalorder %v557_v18, 0  ;;  %vm577_vm11 = vcmp.lt.s32.totalorder %v557_v18, 16  ;;  %v562_v27 = vadd.s32 7, %v2222_v14  ;;  %v1734_v31 = vsel %vm585_vm7, 1.0, %v2067_v29 }
  0x1d   : > { %s1772_s13 = sshll.u32 %s287_s10, 7  ;;  %s2934_s9 = smov (!%p298_p0, %s297_s9), 15  ;;  %v1735_v30 = vsel %vm2234_vm6, 1.0, %v2067_v29  ;;  %vm2251_vm12 = vmand %vm568_vm8, %vm578_vm9  ;;  %vm570_vm13 = vcmp.ge.s32.totalorder %v560_v21, 0  ;;  %vm580_vm14 = vcmp.lt.s32.totalorder %v560_v21, 16  ;;  %vm569_vm2 = vcmp.ge.s32.totalorder %v559_v24, 0 }
  0x1e   : > { %s290_s18 = scalar_lea.vmem %s2888_s0, %s1772_s13  ;;  %s1773_s1 = sshll.u32 %s296_s21, 3  ;;  %vm2256_vm15 = vmand %vm567_vm10, %vm577_vm11  ;;  %vm579_vm3 = vcmp.lt.s32.totalorder %v559_v24, 16  ;;  %v561_v39 = vadd.s32 6, %v2222_v14  ;;  %vm572_vm4 = vcmp.ge.s32.totalorder %v562_v27, 0  ;;  %vm582_vm5 = vcmp.lt.s32.totalorder %v562_v27, 16 }
  0x1f   : > { %s307_s12 = scalar_lea.vmem %s290_s18, %s1775_s20  ;;  %s302_s11 = scalar_lea.vmem %s290_s18, %s1773_s1  ;;  %vm735_vm6 = vcmask 1040384   ;;  %vm736_vm7 = vsmask.f32 256  ;;  %vm2261_vm8 = vmand %vm570_vm13, %vm580_vm14  ;;  %v1737_v47 = vsel %vm2251_vm12, 1.0, %v2067_v29  ;;  %v1736_v48 = vsel %vm2256_vm15, 1.0, %v2067_v29 }
  0x20   : > { %v1959_v2 = vld [vmem:[%s307_s12] sm:$0xff]   ;;  %v1960_v4 = vld [vmem:[%s307_s12 + $0x8] sm:$0xff]   ;;  %s1776_s22 = sshll.u32 %s2934_s9, 3  ;;  %v1961_v5 = vld [vmem:[%s307_s12 + $0x10] sm:$0xff]   ;;  %vm571_vm11 = vcmp.ge.s32.totalorder %v561_v39, 0  ;;  %vm581_vm12 = vcmp.lt.s32.totalorder %v561_v39, 16 }
  0x21   : > { %v1958_v3 = vld [vmem:[%s302_s11] sm:$0xff]   ;;  %s326_s10 = scalar_lea.vmem %s290_s18, %s1776_s22  ;;  %v1962_v6 = vld [vmem:[%s307_s12 + $0x18] sm:$0xff]   ;;  %v1964_v8 = vld [vmem:[%s307_s12 + $0x28] sm:$0xff]   ;;  %vm887_vm13 = vcmask 1046528   ;;  %v2288_v57 = vsel %vm2261_vm8, 1.0, %v2067_v29  ;;  %v2316_v21 = vadd.s32 9, %v2222_v14 }
  0x22   : > { %1811 = vmatprep.mubr.msk.bf16.mxu0 %vm387_vm1, %v1958_v3  ;;  %v1963_v7 = vld [vmem:[%s307_s12 + $0x20] sm:$0xff]   ;;  %v1965_v9 = vld [vmem:[%s307_s12 + $0x30] sm:$0xff]   ;;  %v1966_v10 = vld [vmem:[%s307_s12 + $0x38] sm:$0xff]   ;;  %s2068_s23 = smov 12   ;;  %s2069_s13 = smov 8  }
  0x23   : > { %1812 = vmatmul.mubr.msk.bf16.vlgmr.msra.gmra.mrb[0].mxu0 %vm387_vm1, %v1959_v2  ;;  %v1967_v11 = vld [vmem:[%s326_s10] sm:$0xff]   ;;  %vm2273_vm9 = vmand %vm569_vm2, %vm579_vm3  ;;  %vm758_vm2 = vsmask.f32 7424  ;;  %vm574_vm3 = vcmp.ge.s32.totalorder %v2316_v21, 0  ;;  %s2072_s18 = smov 24   ;;  %s2073_s20 = smov 16  }
  0x24   : > { %1815 = vmatprep.mubr.msk.bf16.mxu0 %vm387_vm1, %v1960_v4  ;;  %1832 = vmatpush3.bf16.msra.mxu0 %v1226_v13  ;;  %vm2280_vm10 = vmand %vm572_vm4, %vm582_vm5  ;;  %v2300_v63 = vsel %vm2273_vm9, 1.0, %v2067_v29  ;;  %vm584_vm4 = vcmp.lt.s32.totalorder %v2316_v21, 16  ;;  %s2074_s10 = smov 28   ;;  %s2075_s1 = smov 32   ;;  %vm1091_vm9 = vcmask 97280  }
  0x25   : > { %vm2293_vm14 = vmand %vm735_vm6, %vm736_vm7  ;;  %v2306_v3 = vsel %vm2280_vm10, 1.0, %v2067_v29  ;;  %vm1108_vm10 = vcmask 130048   ;;  %s1768_s11 = sshll.u32 %s2053_s28, 5  ;;  %s2076_s22 = smov [#allocation2]  }
  0x26   : > { %vm591_vm15 = vmand %vm571_vm11, %vm581_vm12  ;;  %vm1125_vm11 = vcmask 162816   ;;  %vm1142_vm12 = vcmask 195584  }
  0x27   : > { %v2313_v16 = vsel %vm591_vm15, 1.0, %v2067_v29  ;;  %vm594_vm7 = vmand %vm574_vm3, %vm584_vm4  ;;  %vm1368_vm15 = vcmask 293888  }
  0x2b   : > { %1816 = vmatmul.mubr.msk.bf16.gmra.mrb[4].mxu0 %vm387_vm1, %v1961_v5 }
  0x2c   : > { %1819 = vmatprep.mubr.msk.bf16.mxu0 %vm387_vm1, %v1962_v6 }
  0x33   : > { %1820 = vmatmul.mubr.msk.bf16.gmra.mrb[8].mxu0 %vm387_vm1, %v1963_v7 }
  0x34   : > { %1823 = vmatprep.mubr.msk.bf16.mxu0 %vm387_vm1, %v1964_v8 }
  0x3b   : > { %1824 = vmatmul.mubr.msk.bf16.gmra.mrb[12].mxu0 %vm387_vm1, %v1965_v9 }
  0x3c   : > { %1827 = vmatprep.mubr.msk.bf16.mxu0 %vm387_vm1, %v1966_v10 }
  0x43   : > { %1828 = vmatmul.mubr.msk.bf16.gmra.mrb[16].mxu0 %vm387_vm1, %v1967_v11 }
  0xf6   : > { %v1813_v20 = vpop.f32.mrb[0].mxu0 }
  0xf7   : > { %v465_v22 = vadd.f32 %v1813_v20, %v2231_v17  ;;  %v456_v23 = vpop.f32.mrb[1].mxu0 }
  0xf8   : > { %v457_v25 = vadd.f32 %v2231_v17, %v456_v23  ;;  %v1814_v26 = vpop.f32.mrb[2].mxu0 }
  0xf9   : > { %v537_v28 = vmax.f32 %v465_v22, 0.0  ;;  %v468_v32 = vadd.f32 %v1814_v26, %v2231_v17  ;;  %v459_v33 = vpop.f32.mrb[3].mxu0  ;;  %v2319_v22 = vadd.s32 8, %v2222_v14 }
  0xfa   : > { %v535_v34 = vmax.f32 %v457_v25, 0.0  ;;  %v460_v35 = vadd.f32 %v2231_v17, %v459_v33 }
  0xfb   : > { %v538_v37 = vmax.f32 %v468_v32, 0.0  ;;  %v617_v41 = vmul.f32 %v1735_v30, %v537_v28  ;;  %vm573_vm5 = vcmp.ge.s32.totalorder %v2319_v22, 0  ;;  %vm583_vm6 = vcmp.lt.s32.totalorder %v2319_v22, 16 }
  0xfc   : > { %v536_v40 = vmax.f32 %v460_v35, 0.0  ;;  %v615_v44 = vmul.f32 %v1734_v31, %v535_v34  ;;  %vm593_vm8 = vmand %vm573_vm5, %vm583_vm6 }
  0xfd   : > { %v618_v42 = vmul.f32 %v1735_v30, %v538_v37 }
  0xfe   : > { %v616_v45 = vmul.f32 %v1734_v31, %v536_v40  ;;  %v1817_v46 = vpop.f32.mrb[4].mxu0 }
  0xff   : > { %v636_v50 = vpack.c.bf16 %v618_v42, %v617_v41  ;;  %v481_v51 = vadd.f32 %v1817_v46, %v2231_v17  ;;  %v472_v52 = vpop.f32.mrb[5].mxu0 }
 0x100   : > { %v635_v54 = vpack.c.bf16 %v616_v45, %v615_v44  ;;  %v473_v55 = vadd.f32 %v2231_v17, %v472_v52  ;;  %v1818_v56 = vpop.f32.mrb[6].mxu0 }
 0x101   : > { %v653_v58 = vshrl.u32 %v636_v50, 16  ;;  %v541_v59 = vmax.f32 %v481_v51, 0.0  ;;  %v484_v60 = vadd.f32 %v1818_v56, %v2231_v17  ;;  %v475_v61 = vpop.f32.mrb[7].mxu0  ;;  %v656_v5 = vshll.u32 %v636_v50, 16 }
 0x102   : > { %v646_v0 = vshrl.u32 %v635_v54, 16  ;;  %v539_v1 = vmax.f32 %v473_v55, 0.0  ;;  %v476_v2 = vadd.f32 %v2231_v17, %v475_v61  ;;  %v649_v9 = vshll.u32 %v635_v54, 16 }
 0x103   : > { %v655_v4 = vrot.slane %v653_v58, 7  ;;  %v621_v6 = vmul.f32 %v1737_v47, %v541_v59  ;;  %v542_v7 = vmax.f32 %v484_v60, 0.0 }
 0x104   : > { %v648_v8 = vrot.slane %v646_v0, 7  ;;  %v619_v10 = vmul.f32 %v1736_v48, %v539_v1  ;;  %v540_v11 = vmax.f32 %v476_v2, 0.0 }
 0x105   : > { %v622_v12 = vmul.f32 %v1737_v47, %v542_v7  ;;  %v658_v13 = vor.u32 %v656_v5, %v655_v4  ;;  %v749_v15 = vsel %vm2293_vm14, %v655_v4, 0 }
 0x106   : > { %v651_v18 = vor.u32 %v649_v9, %v648_v8  ;;  %v620_v19 = vmul.f32 %v1736_v48, %v540_v11  ;;  %v1821_v20 = vpop.f32.mrb[8].mxu0  ;;  %v779_v25 = vshll.u32 %v749_v15, 16  ;;  %v892_v26 = vrot.slane %v749_v15, 1 }
 0x107   : > { %v638_v23 = vpack.c.bf16 %v622_v12, %v621_v6  ;;  %v2323_v24 = vsel %vm2293_vm14, 0, %v658_v13  ;;  %v488_v27 = vpop.f32.mrb[9].mxu0  ;;  %v748_v31 = vsel %vm2293_vm14, %v648_v8, 0  ;;  %v497_v14 = vadd.f32 %v1821_v20, %v2231_v17 }
 0x108   : > { %v637_v28 = vpack.c.bf16 %v620_v19, %v619_v10  ;;  %929 = vrot.lane.b32.xlu0 %v2323_v24, %s2068_s23  ;;  %v891_v30 = vrot.slane %v2323_v24, 1  ;;  %v1822_v32 = vpop.f32.mrb[10].mxu0  ;;  %v774_v35 = vshll.u32 %v2323_v24, 16  ;;  %v2334_v36 = vsel %vm2293_vm14, 0, %v651_v18 }
 0x109   : > { %v667_v33 = vshrl.u32 %v638_v23, 16  ;;  %v670_v34 = vshll.u32 %v638_v23, 16  ;;  %v491_v37 = vpop.f32.mrb[11].mxu0  ;;  %v772_v40 = vshrl.u32 %v2323_v24, 16  ;;  %v888_v41 = vrot.slane %v2334_v36, 1 }
 0x10a   : > { %v660_v38 = vshrl.u32 %v637_v28, 16  ;;  %v893_v39 = vsel %vm887_vm13, %v891_v30, %v892_v26  ;;  %v663_v43 = vshll.u32 %v637_v28, 16  ;;  %v776_v44 = vrot.slane %v774_v35, 1 }
 0x10b   : > { %v669_v42 = vrot.slane %v667_v33, 7  ;;  %914 = vrot.lane.b32.xlu1 %v893_v39, %s2069_s13  ;;  %v889_v45 = vrot.slane %v748_v31, 1  ;;  %v545_v47 = vmax.f32 %v497_v14, 0.0  ;;  %v489_v48 = vadd.f32 %v2231_v17, %v488_v27 }
 0x10c   : > { %v662_v46 = vrot.slane %v660_v38, 7  ;;  %977 = vrot.lane.b32.xlu0 %v893_v39, %s2070_s16  ;;  %v762_v49 = vshll.u32 %v2334_v36, 16  ;;  %v781_v51 = vrot.slane %v779_v25, 1  ;;  %v777_v52 = vor.u32 %v776_v44, %v772_v40 }
 0x10d   : > { %v672_v50 = vor.u32 %v670_v34, %v669_v42  ;;  %v890_v53 = vsel %vm887_vm13, %v888_v41, %v889_v45  ;;  %v543_v56 = vmax.f32 %v489_v48, 0.0  ;;  %v760_v0 = vshrl.u32 %v2334_v36, 16 }
 0x10e   : > { %v665_v54 = vor.u32 %v663_v43, %v662_v46  ;;  %v2346_v55 = vsel %vm2293_vm14, %v662_v46, 0  ;;  %v764_v58 = vrot.slane %v762_v49, 1  ;;  %v1825_v59 = vpop.f32.mrb[12].mxu0  ;;  %v782_v60 = vsel %vm758_vm2, %v777_v52, %v781_v51 }
 0x10f   : > { %912 = vrot.lane.b32.xlu1 %v890_v53, %s2069_s13  ;;  %v2352_v61 = vsel %vm2293_vm14, 0, %v672_v50  ;;  %v767_v1 = vshll.u32 %v748_v31, 16  ;;  %v504_v2 = vpop.f32.mrb[13].mxu0  ;;  %v791_v4 = vshll.u32 %v2346_v55, 16  ;;  %1833 = vmatprep.mubr.msk.bf16.mxu0 %vm387_vm1, %v782_v60  ;;  %v625_v5 = vmul.f32 %v2288_v57, %v545_v47 }
 0x110   : > { %857 = vrot.lane.b32.xlu0 %v782_v60, %s2071_s17  ;;  %v2363_v6 = vsel %vm2293_vm14, 0, %v665_v54  ;;  %v500_v7 = vadd.f32 %v1822_v32, %v2231_v17  ;;  %v1826_v8 = vpop.f32.mrb[14].mxu0  ;;  %v623_v9 = vmul.f32 %v2300_v63, %v543_v56  ;;  %v765_v12 = vor.u32 %v764_v58, %v760_v0 }
 0x111   : > { %v784_v10 = vshrl.u32 %v2363_v6, 16  ;;  %v786_v11 = vshll.u32 %v2363_v6, 16  ;;  %v507_v13 = vpop.f32.mrb[15].mxu0  ;;  %v769_v15 = vrot.slane %v767_v1, 1  ;;  %v751_v19 = vsel %vm2293_vm14, %v669_v42, 0 }
 0x112   : > { %v546_v18 = vmax.f32 %v500_v7, 0.0  ;;  %v798_v20 = vshll.u32 %v2352_v61, 16  ;;  %v796_v25 = vshrl.u32 %v2352_v61, 16  ;;  %v803_v26 = vshll.u32 %v751_v19, 16 }
 0x113   : > { %996 = vrot.lane.b32.xlu1 %v2352_v61, %s2072_s18  ;;  %v788_v23 = vrot.slane %v786_v11, 1  ;;  %v492_v27 = vadd.f32 %v2231_v17, %v491_v37  ;;  %v897_v31 = vrot.slane %v2352_v61, 1  ;;  %v898_v14 = vrot.slane %v751_v19, 1 }
 0x114   : > { %957 = vrot.lane.b32.xlu0 %v782_v60, %s2073_s20  ;;  %v626_v28 = vmul.f32 %v2288_v57, %v546_v18  ;;  %v800_v30 = vrot.slane %v798_v20, 1  ;;  %v793_v32 = vrot.slane %v791_v4, 1  ;;  %v770_v34 = vsel %vm758_vm2, %v765_v12, %v769_v15 }
 0x115   : > { %v789_v33 = vor.u32 %v788_v23, %v784_v10  ;;  %v544_v35 = vmax.f32 %v492_v27, 0.0  ;;  %v805_v40 = vrot.slane %v803_v26, 1  ;;  %v894_v41 = vrot.slane %v2363_v6, 1 }
 0x116   : > { %v640_v38 = vpack.c.bf16 %v626_v28, %v625_v5  ;;  %v801_v39 = vor.u32 %v800_v30, %v796_v25  ;;  %v1829_v37 = vpop.f32.mrb[16].mxu0  ;;  %v513_v43 = vadd.f32 %v1825_v59, %v2231_v17  ;;  %v505_v44 = vadd.f32 %v2231_v17, %v504_v2 }
 0x117   : > { %931 = vrot.lane.b32.xlu1 %v2363_v6, %s2068_s23  ;;  %v2386_v57 = vsel %vm758_vm2, %v789_v33, %v793_v32  ;;  %v624_v42 = vmul.f32 %v2300_v63, %v544_v35  ;;  %v520_v45 = vpop.f32.mrb[17].mxu0  ;;  %v2398_v49 = vsel %vm887_vm13, %v897_v31, %v898_v14  ;;  %v516_v53 = vadd.f32 %v1826_v8, %v2231_v17  ;;  %v2463_v35 = vld [vmem:[%s2893_s5] sm:$0xff]  }
 0x118   : > { %1834 = vmatmul.mubr.msk.bf16.vlgmr.msra.gmra.mrb[20].mxu0 %vm387_vm1, %v2386_v57  ;;  %855 = vrot.lane.b32.xlu0 %v770_v34, %s2071_s17  ;;  %v681_v46 = vshrl.u32 %v640_v38, 16  ;;  %v684_v47 = vshll.u32 %v640_v38, 16  ;;  %v2395_v48 = vsel %vm758_vm2, %v801_v39, %v805_v40  ;;  %v2400_v50 = vpop.f32.mrb[18].mxu0  ;;  %v549_v51 = vmax.f32 %v513_v43, 0.0 }
 0x119   : > { %1837 = vmatprep.mubr.msk.bf16.mxu0 %vm387_vm1, %v2395_v48  ;;  %v639_v63 = vpack.c.bf16 %v624_v42, %v623_v9  ;;  %v547_v52 = vmax.f32 %v505_v44, 0.0  ;;  %v2405_v54 = vpop.f32.mrb[19].mxu0  ;;  %v895_v58 = vrot.slane %v2346_v55, 1  ;;  %v508_v59 = vadd.f32 %v2231_v17, %v507_v13  ;;  %1849 = vmatprep.subr.bf16.mxu1 %v2463_v35 }
 0x11a   : > { %v683_v56 = vrot.slane %v681_v46, 7  ;;  %v529_v60 = vadd.f32 %v1829_v37, %v2231_v17  ;;  %v629_v2 = vmul.f32 %v2306_v3, %v549_v51  ;;  %v550_v7 = vmax.f32 %v516_v53, 0.0 }
 0x11b   : > { %v674_v0 = vshrl.u32 %v639_v63, 16  ;;  %v677_v1 = vshll.u32 %v639_v63, 16  ;;  %918 = vrot.lane.b32.xlu1 %v2398_v49, %s2069_s13  ;;  %v627_v4 = vmul.f32 %v2313_v16, %v547_v52  ;;  %v548_v21 = vmax.f32 %v508_v59, 0.0 }
 0x11c   : > { %v686_v5 = vor.u32 %v684_v47, %v683_v56  ;;  %933 = vrot.lane.b32.xlu0 %v2352_v61, %s2068_s23  ;;  %v2422_v55 = vsel %vm2293_vm14, %v683_v56, 0  ;;  %v2425_v9 = vsel %vm887_vm13, %v894_v41, %v895_v58  ;;  %v2429_v11 = vsel %vm594_vm7, 1.0, %v2067_v29 }
 0x11d   : > { %v676_v8 = vrot.slane %v674_v0, 7  ;;  %v827_v10 = vshll.u32 %v2422_v55, 16  ;;  %v630_v13 = vmul.f32 %v2306_v3, %v550_v7  ;;  %v628_v15 = vmul.f32 %v2313_v16, %v548_v21 }
 0x11e   : > { %v2437_v12 = vsel %vm2293_vm14, 0, %v686_v5  ;;  %v521_v18 = vadd.f32 %v2231_v17, %v520_v45  ;;  %v1742_v26 = vsel %vm593_vm8, 1.0, %v2067_v29  ;;  %v553_v31 = vmax.f32 %v529_v60, 0.0 }
 0x11f   : > { %v679_v19 = vor.u32 %v677_v1, %v676_v8  ;;  %979 = vrot.lane.b32.xlu1 %v2425_v9, %s2070_s16  ;;  %v2446_v20 = vsel %vm2293_vm14, %v676_v8, 0  ;;  %v820_v22 = vshrl.u32 %v2437_v12, 16  ;;  %v822_v23 = vshll.u32 %v2437_v12, 16 }
 0x120   : > { %994 = vrot.lane.b32.xlu0 %v2363_v6, %s2072_s18  ;;  %v815_v3 = vshll.u32 %v2446_v20, 16  ;;  %v642_v16 = vpack.c.bf16 %v630_v13, %v629_v2  ;;  %v641_v25 = vpack.c.bf16 %v628_v15, %v627_v4  ;;  %v829_v30 = vrot.slane %v827_v10, 1 }
 0x121   : > { %v2456_v27 = vsel %vm2293_vm14, 0, %v679_v19  ;;  %v824_v28 = vrot.slane %v822_v23, 1  ;;  %v551_v34 = vmax.f32 %v521_v18, 0.0  ;;  %v633_v45 = vmul.f32 %v2429_v11, %v553_v31 }
 0x122   : > { %v808_v14 = vshrl.u32 %v2456_v27, 16  ;;  %v810_v32 = vshll.u32 %v2456_v27, 16  ;;  %v695_v33 = vshrl.u32 %v642_v16, 16  ;;  %v698_v38 = vshll.u32 %v642_v16, 16 }
 0x123   : > { %1024 = vrot.lane.b32.xlu1 %v2395_v48, %s2074_s10  ;;  %v825_v29 = vor.u32 %v824_v28, %v820_v22  ;;  %v688_v39 = vshrl.u32 %v641_v25, 16  ;;  %v691_v40 = vshll.u32 %v641_v25, 16  ;;  %v817_v37 = vrot.slane %v815_v3, 1 }
 0x124   : > { %1044 = vrot.lane.b32.xlu0 %v2398_v49, %s2075_s1  ;;  %v812_v41 = vrot.slane %v810_v32, 1  ;;  %v697_v42 = vrot.slane %v695_v33, 7  ;;  %v631_v51 = vmul.f32 %v1742_v26, %v551_v34  ;;  %v532_v58 = vadd.f32 %v2400_v50, %v2231_v17 }
 0x125   : > { %v2471_v43 = vsel %vm758_vm2, %v825_v29, %v829_v30  ;;  %v690_v44 = vrot.slane %v688_v39, 7  ;;  %v524_v1 = vadd.f32 %v2231_v17, %v2405_v54  ;;  %v900_v62 = vrot.slane %v2456_v27, 1 }
 0x126   : > { %v813_v46 = vor.u32 %v812_v41, %v808_v14  ;;  %1841 = vmatprep.mubr.msk.bf16.mxu1 %vm387_vm1, %v2471_v43  ;;  %v700_v47 = vor.u32 %v698_v38, %v697_v42  ;;  %v755_v63 = vsel %vm2293_vm14, %v697_v42, 0  ;;  %v554_v8 = vmax.f32 %v532_v58, 0.0  ;;  %v1969_v14 = vld [vmem:[%s2893_s5 + $0x8] sm:$0xff]  }
 0x127   : > { %861 = vrot.lane.b32.xlu1 %v2395_v48, %s2071_s17  ;;  %v693_v52 = vor.u32 %v691_v40, %v690_v44  ;;  %v754_v53 = vsel %vm2293_vm14, %v690_v44, 0  ;;  %v851_v56 = vshll.u32 %v755_v63, 16  ;;  %v552_v54 = vmax.f32 %v524_v1, 0.0 }
 0x128   : > { %981 = vrot.lane.b32.xlu0 %v2398_v49, %s2070_s16  ;;  %v2487_v59 = vsel %vm758_vm2, %v813_v46, %v817_v37  ;;  %v839_v60 = vshll.u32 %v754_v53, 16  ;;  %v2491_v0 = vsel %vm2293_vm14, 0, %v700_v47  ;;  %v910_v13 = vrot.slane %v755_v63, 1 }
 0x129   : > { %1838 = vmatmul.mubr.msk.bf16.gmra.mrb[24].mxu0 %vm387_vm1, %v2487_v59  ;;  %v2499_v50 = vsel %vm2293_vm14, 0, %v693_v52  ;;  %v844_v49 = vshrl.u32 %v2491_v0, 16  ;;  %v846_v2 = vshll.u32 %v2491_v0, 16  ;;  %v853_v4 = vrot.slane %v851_v56, 1 }
 0x12a   : > { %v832_v5 = vshrl.u32 %v2499_v50, 16  ;;  %v834_v7 = vshll.u32 %v2499_v50, 16  ;;  %v841_v21 = vrot.slane %v839_v60, 1  ;;  %v909_v10 = vrot.slane %v2491_v0, 1 }
 0x12b   : > { %959 = vrot.lane.b32.xlu1 %v2386_v57, %s2073_s20  ;;  %v848_v17 = vrot.slane %v846_v2, 1  ;;  %v634_v18 = vmul.f32 %v2429_v11, %v554_v8  ;;  %v906_v19 = vrot.slane %v2499_v50, 1  ;;  %v907_v22 = vrot.slane %v754_v53, 1 }
 0x12c   : > { %1042 = vrot.lane.b32.xlu0 %v2425_v9, %s2075_s1  ;;  %v836_v15 = vrot.slane %v834_v7, 1  ;;  %v632_v3 = vmul.f32 %v1742_v26, %v552_v54  ;;  %v2513_v16 = vsel %vm887_vm13, %v909_v10, %v910_v13  ;;  %v904_v40 = vrot.slane %v2422_v55, 1 }
 0x12d   : > { %v849_v23 = vor.u32 %v848_v17, %v844_v49  ;;  %v644_v28 = vpack.c.bf16 %v634_v18, %v633_v45  ;;  %v2516_v30 = vsel %vm887_vm13, %v906_v19, %v907_v22  ;;  %v901_v56 = vrot.slane %v2446_v20, 1 }
 0x12e   : > { %v837_v25 = vor.u32 %v836_v15, %v832_v5  ;;  %v643_v11 = vpack.c.bf16 %v632_v3, %v631_v51 }
 0x12f   : > { %859 = vrot.lane.b32.xlu1 %v2386_v57, %s2071_s17  ;;  %v2521_v31 = vsel %vm758_vm2, %v849_v23, %v853_v4  ;;  %v709_v32 = vshrl.u32 %v644_v28, 16  ;;  %v712_v33 = vshll.u32 %v644_v28, 16  ;;  %v902_v10 = vsel %vm887_vm13, %v900_v62, %v901_v56 }
 0x130   : > { %916 = vrot.lane.b32.xlu0 %v2425_v9, %s2069_s13  ;;  %v2529_v26 = vsel %vm758_vm2, %v837_v25, %v841_v21  ;;  %v702_v34 = vshrl.u32 %v643_v11, 16  ;;  %v705_v29 = vshll.u32 %v643_v11, 16  ;;  %v1970_v9 = vld [vmem:[%s2893_s5 + $0x10] ss:$0 sps:$4 sm:$0x33]  }
 0x131   : > { %1842 = vmatmul.mubr.msk.bf16.vlgmr.msra.gmra.mrb[0].mxu1 %vm387_vm1, %v2529_v26  ;;  %v711_v38 = vrot.slane %v709_v32, 7 }
 0x132   : > { %1845 = vmatprep.mubr.msk.bf16.mxu1 %vm387_vm1, %v2521_v31  ;;  %1850 = vmatpush3.bf16.msra.mxu1 %v2463_v35  ;;  %v704_v39 = vrot.slane %v702_v34, 7  ;;  %v903_v35 = vrot.slane %v2437_v12, 1 }
 0x133   : > { %1000 = vrot.lane.b32.xlu1 %v2437_v12, %s2072_s18  ;;  %1851 = vmatprep.subr.bf16.mxu1 %v1969_v14  ;;  %v714_v41 = vor.u32 %v712_v33, %v711_v38  ;;  %v757_v37 = vsel %vm2293_vm14, %v711_v38, 0 }
 0x134   : > { %961 = vrot.lane.b32.xlu0 %v2395_v48, %s2073_s20  ;;  %v707_v42 = vor.u32 %v705_v29, %v704_v39  ;;  %v756_v44 = vsel %vm2293_vm14, %v704_v39, 0  ;;  %v1018_v45 = vshll.u32 %v757_v37, 16  ;;  %v1386_v48 = vsel %vm418_vm0, %v1970_v9, 0 }
 0x135   : > { %v953_v46 = vshll.u32 %v756_v44, 16  ;;  %v747_v47 = vsel %vm2293_vm14, 0, %v714_v41  ;;  %v975_v63 = vrot.slane %v756_v44, 1  ;;  %v1040_v53 = vrot.slane %v757_v37, 1 }
 0x136   : > { %1852 = vmatpush3.bf16.msra.mxu1 %v1969_v14  ;;  %v746_v55 = vsel %vm2293_vm14, 0, %v707_v42  ;;  %v1011_v51 = vshrl.u32 %v747_v47, 16  ;;  %v1013_v52 = vshll.u32 %v747_v47, 16  ;;  %v905_v49 = vsel %vm887_vm13, %v903_v35, %v904_v40 }
 0x137   : > { %935 = vrot.lane.b32.xlu1 %v2456_v27, %s2068_s23  ;;  %1876 = vmatprep.subr.msk.bf16.mxu1 %vm418_vm0, %v1970_v9  ;;  %v946_v58 = vshrl.u32 %v746_v55, 16  ;;  %v948_v60 = vshll.u32 %v746_v55, 16  ;;  %v974_v1 = vrot.slane %v746_v55, 1  ;;  %v1020_v4 = vrot.slane %v1018_v45, 1 }
 0x138   : > { %1022 = vrot.lane.b32.xlu0 %v2386_v57, %s2074_s10  ;;  %v1015_v2 = vrot.slane %v1013_v52, 1  ;;  %v1039_v5 = vrot.slane %v747_v47, 1  ;;  %v955_v21 = vrot.slane %v953_v46, 1  ;;  %vm1074_vm0 = vcmask 64512  }
 0x139   : > { %v950_v7 = vrot.slane %v948_v60, 1  ;;  %v976_v8 = vsel %vm887_vm13, %v974_v1, %v975_v63  ;;  %vm1176_vm14 = vcmask 261120  }
 0x13a   : > { %1854 = vmatpush3.bf16.msra.mxu1 %v1386_v48  ;;  %v1016_v57 = vor.u32 %v1015_v2, %v1011_v51  ;;  %v1041_v20 = vsel %vm887_vm13, %v1039_v5, %v1040_v53  ;;  %vm1159_vm13 = vcmask 228352  }
 0x13b   : > { %922 = vrot.lane.b32.xlu1 %v905_v49, %s2069_s13  ;;  %v951_v17 = vor.u32 %v950_v7, %v946_v58 }
 0x13c   : > { %937 = vrot.lane.b32.xlu0 %v2437_v12, %s2068_s23  ;;  %v1021_v54 = vsel %vm758_vm2, %v1016_v57, %v1020_v4 }
 0x13d   : > { %v956_v13 = vsel %vm758_vm2, %v951_v17, %v955_v21 }
 0x13e   : > { %1846 = vmatmul.mubr.msk.bf16.gmra.mrb[4].mxu1 %vm387_vm1, %v956_v13 }
 0x13f   : > { %983 = vrot.lane.b32.xlu1 %v902_v10, %s2070_s16 }
 0x140   : > { %998 = vrot.lane.b32.xlu0 %v2456_v27, %s2072_s18 }
 0x143   : > { %1028 = vrot.lane.b32.xlu1 %v2471_v43, %s2074_s10 }
 0x144   : > { %1048 = vrot.lane.b32.xlu0 %v905_v49, %s2075_s1 }
 0x147   : > { %865 = vrot.lane.b32.xlu1 %v2471_v43, %s2071_s17 }
 0x148   : > { %985 = vrot.lane.b32.xlu0 %v905_v49, %s2070_s16 }
 0x14b   : > { %963 = vrot.lane.b32.xlu1 %v2487_v59, %s2073_s20 }
 0x14c   : > { %1046 = vrot.lane.b32.xlu0 %v902_v10, %s2075_s1 }
 0x14f   : > { %863 = vrot.lane.b32.xlu1 %v2487_v59, %s2071_s17 }
 0x150   : > { %920 = vrot.lane.b32.xlu0 %v902_v10, %s2069_s13 }
 0x153   : > { %1004 = vrot.lane.b32.xlu1 %v2491_v0, %s2072_s18 }
 0x154   : > { %965 = vrot.lane.b32.xlu0 %v2471_v43, %s2073_s20 }
 0x157   : > { %939 = vrot.lane.b32.xlu1 %v2499_v50, %s2068_s23 }
 0x158   : > { %1026 = vrot.lane.b32.xlu0 %v2487_v59, %s2074_s10 }
 0x15b   : > { %926 = vrot.lane.b32.xlu1 %v2513_v16, %s2069_s13 }
 0x15c   : > { %941 = vrot.lane.b32.xlu0 %v2491_v0, %s2068_s23 }
 0x15f   : > { %987 = vrot.lane.b32.xlu1 %v2516_v30, %s2070_s16 }
 0x160   : > { %1002 = vrot.lane.b32.xlu0 %v2499_v50, %s2072_s18 }
 0x163   : > { %1032 = vrot.lane.b32.xlu1 %v2521_v31, %s2074_s10 }
 0x164   : > { %1052 = vrot.lane.b32.xlu0 %v2513_v16, %s2075_s1 }
 0x167   : > { %869 = vrot.lane.b32.xlu1 %v2521_v31, %s2071_s17 }
 0x168   : > { %989 = vrot.lane.b32.xlu0 %v2513_v16, %s2070_s16 }
 0x16b   : > { %967 = vrot.lane.b32.xlu1 %v2529_v26, %s2073_s20 }
 0x16c   : > { %1050 = vrot.lane.b32.xlu0 %v2516_v30, %s2075_s1 }
 0x16f   : > { %867 = vrot.lane.b32.xlu1 %v2529_v26, %s2071_s17 }
 0x170   : > { %924 = vrot.lane.b32.xlu0 %v2516_v30, %s2069_s13 }
 0x173   : > { %1008 = vrot.lane.b32.xlu1 %v747_v47, %s2072_s18 }
 0x174   : > { %969 = vrot.lane.b32.xlu0 %v2521_v31, %s2073_s20 }
 0x177   : > { %943 = vrot.lane.b32.xlu1 %v746_v55, %s2068_s23  ;;  %s283_s23 = sand.u32 1, %s2041_s25  }
 0x178   : > { %1030 = vrot.lane.b32.xlu0 %v2529_v26, %s2074_s10  ;;  %s2835_s17 = scalar_lea.sflag [#allocation3], %s283_s23 }
 0x17a   : > { %v930_v43 = vpop.permute.xlu0 %929 }
 0x17b   : > { %991 = vrot.lane.b32.xlu1 %v976_v8, %s2070_s16 }
 0x17c   : > { %1006 = vrot.lane.b32.xlu0 %v746_v55, %s2072_s18  ;;  %s1702_s18 = sshll.u32 %s283_s23, 7 }
 0x17d   : > { %v915_v59 = vpop.permute.xlu1 %914 }
 0x17e   : > { %v978_v15 = vpop.permute.xlu0 %977 }
 0x17f   : > { %1036 = vrot.lane.b32.xlu1 %v1021_v54, %s2074_s10 }
 0x180   : > { %1034 = vrot.lane.b32.xlu0 %v956_v13, %s2074_s10  ;;  %s1975_s10 = sshll.u32 %s2076_s22, 4  ;;  %s1976_s10 = int_to_ptr.vmem [resolvable:$false] %s1975_s10 }
 0x181   : > { %v913_v18 = vpop.permute.xlu1 %912 }
 0x182   : > { %v858_v19 = vpop.permute.xlu0 %857 }
 0x183   : > { %971 = vrot.lane.b32.xlu1 %v956_v13, %s2073_s20  ;;  %v1061_v33 = vsel %vm387_vm1, %v2323_v24, %v858_v19  ;;  %s2709_s20 = scalar_lea.vmem [#allocation2], %s1702_s18 }
 0x184   : > { %1054 = vrot.lane.b32.xlu0 %v976_v8, %s2075_s1  ;;  %v1078_v9 = vsel %vm1074_vm0, %v1061_v33, %v915_v59  ;;  %s1615_s9 = sshll.u32 %s2709_s20, 4  ;;  %s2822_s9 = int_to_ptr.vmem [resolvable:$true] %s1615_s9 }
 0x185   : > { %v997_v22 = vpop.permute.xlu1 %996  ;;  %s1971_s18 = scalar_lea.vmem %s2822_s9, 2048  ;;  %p1978_p5 = scmp.lt.s32.totalorder %s2822_s9, %s1976_s10 }
 0x186   : > { %v958_v23 = vpop.permute.xlu0 %957  ;;  %p1972_p1 = scmp.ne.s32.totalorder %s2822_s9, %s1971_s18 }
 0x187   : > { %1056 = vrot.lane.b32.xlu1 %v1041_v20, %s2075_s1  ;;  %s1777_s1 = sshll.u32 %s2049_s27, 4 }
 0x188   : > { %s1612_s12 = sadd.s32 %s1777_s1, %s1768_s11  ;;  %p1973_p2 = pnand %p1972_p1, %p2169_p3 }
 0x189   : > { %v932_v3 = vpop.permute.xlu1 %931  ;;  %s1769_s21 = sshll.u32 %s1612_s12, 7  ;;  %s1977_s1 = scalar_lea.vmem %s1976_s10, 4096 }
 0x18a   : > { %v856_v16 = vpop.permute.xlu0 %855  ;;  %v1095_v39 = vsel %vm1091_vm9, %v1078_v9, %v932_v3  ;;  %s2829_s16 = scalar_lea.hbm %s2895_s7, %s1769_s21  ;;  %p1974_p4 = pneg %p1973_p2 }
 0x18b   : > { %v1059_v34 = vsel %vm387_vm1, %v2334_v36, %v856_v16  ;;  %p1979_p6 = scmp.lt.s32.totalorder %s1977_s1, %s1971_s18 }
 0x18c   : > { %v1076_v40 = vsel %vm1074_vm0, %v1059_v34, %v913_v18 }
 0x18d   : > { %v919_v25 = vpop.permute.xlu1 %918  ;;  %v1093_v24 = vsel %vm1091_vm9, %v1076_v40, %v930_v43  ;;  %p1980_p7 = por %p1979_p6, %p1978_p5 }
 0x18e   : > { %v934_v28 = vpop.permute.xlu0 %933  ;;  %v1110_v36 = vsel %vm1108_vm10, %v1093_v24, %v958_v23 }
 0x18f   : > { %v1127_v47 = vsel %vm1125_vm11, %v1110_v36, %v978_v15  ;;  %p1981_p9 = pnand %p1980_p7, %p1974_p4 }
 0x191   : > { %v980_v30 = vpop.permute.xlu1 %979 }
 0x192   : > { %v995_v31 = vpop.permute.xlu0 %994 }
 0x193   : > { %v1144_v48 = vsel %vm1142_vm12, %v1127_v47, %v995_v31 }
 0x195   : > { %v1025_v11 = vpop.permute.xlu1 %1024 }
 0x196   : > { %v1045_v14 = vpop.permute.xlu0 %1044 }
 0x199   : > { %v862_v26 = vpop.permute.xlu1 %861 }
 0x19a   : > { %v982_v32 = vpop.permute.xlu0 %981  ;;  %v1065_v7 = vsel %vm387_vm1, %v2352_v61, %v862_v26 }
 0x19b   : > { %v1082_v20 = vsel %vm1074_vm0, %v1065_v7, %v919_v25 }
 0x19d   : > { %v960_v29 = vpop.permute.xlu1 %959 }
 0x19e   : > { %v1043_v38 = vpop.permute.xlu0 %1042  ;;  %v1112_v41 = vsel %vm1108_vm10, %v1095_v39, %v960_v29 }
 0x19f   : > { %v1129_v42 = vsel %vm1125_vm11, %v1112_v41, %v980_v30 }
 0x1a0   : > { %v1146_v46 = vsel %vm1142_vm12, %v1129_v42, %v997_v22 }
 0x1a1   : > { %v860_v37 = vpop.permute.xlu1 %859  ;;  %v1163_v55 = vsel %vm1159_vm13, %v1146_v46, %v1025_v11 }
 0x1a2   : > { %v917_v35 = vpop.permute.xlu0 %916  ;;  %v1180_v58 = vsel %vm1176_vm14, %v1163_v55, %v1045_v14  ;;  %v1063_v57 = vsel %vm387_vm1, %v2363_v6, %v860_v37 }
 0x1a3   : > { %v1080_v13 = vsel %vm1074_vm0, %v1063_v57, %v917_v35 }
 0x1a4   : > { %v1097_v15 = vsel %vm1091_vm9, %v1080_v13, %v934_v28 }
 0x1a5   : > { %v1001_v44 = vpop.permute.xlu1 %1000 }
 0x1a6   : > { %v962_v45 = vpop.permute.xlu0 %961 }
 0x1a7   : > { %v1114_v18 = vsel %vm1108_vm10, %v1097_v15, %v962_v45 }
 0x1a8   : > { %v1131_v22 = vsel %vm1125_vm11, %v1114_v18, %v982_v32 }
 0x1a9   : > { %v936_v63 = vpop.permute.xlu1 %935 }
 0x1aa   : > { %v1023_v51 = vpop.permute.xlu0 %1022  ;;  %v1099_v17 = vsel %vm1091_vm9, %v1082_v20, %v936_v63 }
 0x1ab   : > { %v1161_v52 = vsel %vm1159_vm13, %v1144_v48, %v1023_v51  ;;  %v2690_v51 = vld [vmem:[%s2892_s4] ss:$0 sm:$0xff] }
 0x1ac   : > { %v1178_v53 = vsel %vm1176_vm14, %v1161_v52, %v1043_v38 }
 0x1ad   : > { %v923_v56 = vpop.permute.xlu1 %922  ;;  %1855 = vmatprep.mubr.msk.bf16.mxu1 %vm1368_vm15, %v1178_v53 }
 0x1ae   : > { %1856 = vmatmul.mubr.msk.bf16.vlgmr.msra.gmra.mrb[8].mxu1 %vm1368_vm15, %v1180_v58  ;;  %v938_v60 = vpop.permute.xlu0 %937 }
 0x1b1   : > { %v984_v1 = vpop.permute.xlu1 %983 }
 0x1b2   : > { %v999_v49 = vpop.permute.xlu0 %998 }
 0x1b3   : > { %v1148_v3 = vsel %vm1142_vm12, %v1131_v22, %v999_v49 }
 0x1b5   : > { %v1029_v2 = vpop.permute.xlu1 %1028 }
 0x1b6   : > { %v1049_v4 = vpop.permute.xlu0 %1048 }
 0x1b9   : > { %v866_v5 = vpop.permute.xlu1 %865 }
 0x1ba   : > { %v986_v62 = vpop.permute.xlu0 %985  ;;  %v1069_v9 = vsel %vm387_vm1, %v2437_v12, %v866_v5 }
 0x1bb   : > { %v1086_v37 = vsel %vm1074_vm0, %v1069_v9, %v923_v56 }
 0x1bd   : > { %v964_v21 = vpop.permute.xlu1 %963 }
 0x1be   : > { %v1047_v8 = vpop.permute.xlu0 %1046  ;;  %v1116_v54 = vsel %vm1108_vm10, %v1099_v17, %v964_v21 }
 0x1bf   : > { %v1133_v59 = vsel %vm1125_vm11, %v1116_v54, %v984_v1 }
 0x1c0   : > { %v1150_v6 = vsel %vm1142_vm12, %v1133_v59, %v1001_v44 }
 0x1c1   : > { %v864_v10 = vpop.permute.xlu1 %863  ;;  %v1167_v25 = vsel %vm1159_vm13, %v1150_v6, %v1029_v2 }
 0x1c2   : > { %v921_v43 = vpop.permute.xlu0 %920  ;;  %v1184_v28 = vsel %vm1176_vm14, %v1167_v25, %v1049_v4  ;;  %v1067_v41 = vsel %vm387_vm1, %v2456_v27, %v864_v10 }
 0x1c3   : > { %v1084_v44 = vsel %vm1074_vm0, %v1067_v41, %v921_v43 }
 0x1c4   : > { %v1101_v12 = vsel %vm1091_vm9, %v1084_v44, %v938_v60 }
 0x1c5   : > { %v1005_v61 = vpop.permute.xlu1 %1004 }
 0x1c6   : > { %v966_v19 = vpop.permute.xlu0 %965 }
 0x1c7   : > { %v1118_v47 = vsel %vm1108_vm10, %v1101_v12, %v966_v19 }
 0x1c8   : > { %v1135_v48 = vsel %vm1125_vm11, %v1118_v47, %v986_v62 }
 0x1c9   : > { %v940_v23 = vpop.permute.xlu1 %939 }
 0x1ca   : > { %v1027_v16 = vpop.permute.xlu0 %1026  ;;  %v1103_v35 = vsel %vm1091_vm9, %v1086_v37, %v940_v23 }
 0x1cb   : > { %v1165_v30 = vsel %vm1159_vm13, %v1148_v3, %v1027_v16 }
 0x1cc   : > { %v1182_v31 = vsel %vm1176_vm14, %v1165_v30, %v1047_v8 }
 0x1cd   : > { %v2668_v11 = vpop.permute.xlu1 %926  ;;  %1859 = vmatprep.mubr.msk.bf16.mxu1 %vm1368_vm15, %v1182_v31 }
 0x1ce   : > { %1860 = vmatmul.mubr.msk.bf16.gmra.mrb[12].mxu1 %vm1368_vm15, %v1184_v28  ;;  %v942_v14 = vpop.permute.xlu0 %941 }
 0x1d1   : > { %v988_v26 = vpop.permute.xlu1 %987 }
 0x1d2   : > { %v1003_v32 = vpop.permute.xlu0 %1002 }
 0x1d3   : > { %v1152_v52 = vsel %vm1142_vm12, %v1135_v48, %v1003_v32 }
 0x1d5   : > { %v1033_v33 = vpop.permute.xlu1 %1032 }
 0x1d6   : > { %v1053_v34 = vpop.permute.xlu0 %1052 }
 0x1d9   : > { %v870_v29 = vpop.permute.xlu1 %869 }
 0x1da   : > { %v990_v38 = vpop.permute.xlu0 %989  ;;  %v1073_v59 = vsel %vm387_vm1, %v2491_v0, %v870_v29 }
 0x1db   : > { %v1090_v6 = vsel %vm1074_vm0, %v1073_v59, %v2668_v11 }
 0x1dd   : > { %v968_v39 = vpop.permute.xlu1 %967 }
 0x1de   : > { %v1051_v40 = vpop.permute.xlu0 %1050  ;;  %v1120_v24 = vsel %vm1108_vm10, %v1103_v35, %v968_v39 }
 0x1df   : > { %v1137_v45 = vsel %vm1125_vm11, %v1120_v24, %v988_v26 }
 0x1e0   : > { %v1154_v27 = vsel %vm1142_vm12, %v1137_v45, %v1005_v61 }
 0x1e1   : > { %v868_v42 = vpop.permute.xlu1 %867  ;;  %v1171_v58 = vsel %vm1159_vm13, %v1154_v27, %v1033_v33 }
 0x1e2   : > { %v925_v36 = vpop.permute.xlu0 %924  ;;  %v1071_v53 = vsel %vm387_vm1, %v2499_v50, %v868_v42  ;;  %v1188_v50 = vsel %vm1176_vm14, %v1171_v58, %v1053_v34  ;;  %vm1581_vm1 = vcmask 130112  }
 0x1e3   : > { %v1088_v5 = vsel %vm1074_vm0, %v1071_v53, %v925_v36 }
 0x1e4   : > { %v1105_v13 = vsel %vm1091_vm9, %v1088_v5, %v942_v14 }
 0x1e5   : > { %v1009_v46 = vpop.permute.xlu1 %1008 }
 0x1e6   : > { %v970_v63 = vpop.permute.xlu0 %969 }
 0x1e7   : > { %v1122_v15 = vsel %vm1108_vm10, %v1105_v13, %v970_v63 }
 0x1e8   : > { %v1139_v22 = vsel %vm1125_vm11, %v1122_v15, %v990_v38 }
 0x1e9   : > { %v944_v55 = vpop.permute.xlu1 %943 }
 0x1ea   : > { %v1031_v56 = vpop.permute.xlu0 %1030  ;;  %v1107_v23 = vsel %vm1091_vm9, %v1090_v6, %v944_v55 }
 0x1eb   : > { %v1169_v60 = vsel %vm1159_vm13, %v1152_v52, %v1031_v56  ;;  %v1835_v1 = vpop.f32.mrb[20].mxu0 }
 0x1ec   : > { %v1271_v49 = vadd.f32 %v1835_v1, %v2690_v51  ;;  %v1262_v2 = vpop.f32.mrb[21].mxu0  ;;  %v1186_v4 = vsel %vm1176_vm14, %v1169_v60, %v1051_v40 }
 0x1ed   : > { %v1263_v62 = vadd.f32 %v2690_v51, %v1262_v2  ;;  %v1836_v7 = vpop.f32.mrb[22].mxu0  ;;  %v992_v21 = vpop.permute.xlu1 %991  ;;  %1863 = vmatprep.mubr.msk.bf16.mxu1 %vm1368_vm15, %v1186_v4 }
 0x1ee   : > { %v1327_v8 = vmax.f32 %v1271_v49, 0.0  ;;  %v1274_v57 = vadd.f32 %v1836_v7, %v2690_v51  ;;  %v1265_v20 = vpop.f32.mrb[23].mxu0  ;;  %1864 = vmatmul.mubr.msk.bf16.gmra.mrb[16].mxu1 %vm1368_vm15, %v1188_v50  ;;  %v1007_v17 = vpop.permute.xlu0 %1006 }
 0x1ef   : > { %v1325_v54 = vmax.f32 %v1263_v62, 0.0  ;;  %v1266_v10 = vadd.f32 %v2690_v51, %v1265_v20  ;;  %v1156_v0 = vsel %vm1142_vm12, %v1139_v22, %v1007_v17 }
 0x1f0   : > { %1503 = vst.msk [vmem:[%s2709_s20 + $0x10] sm:$0xff] %vm1074_vm0, %v1327_v8  ;;  %v1328_v43 = vmax.f32 %v1274_v57, 0.0  ;;  %v1753_v8 = vld [vmem:[%s2894_s6] ss:$0 sm:$0xff] }
 0x1f1   : > { %1501 = vst.msk [vmem:[%s2709_s20] sm:$0xff] %vm1074_vm0, %v1325_v54  ;;  %v1326_v61 = vmax.f32 %v1266_v10, 0.0  ;;  %v1037_v18 = vpop.permute.xlu1 %1036 }
 0x1f2   : > { %1504 = vst.msk [vmem:[%s2709_s20 + $0x18] sm:$0xff] %vm1074_vm0, %v1328_v43  ;;  %v1035_v19 = vpop.permute.xlu0 %1034 }
 0x1f3   : > { %1502 = vst.msk [vmem:[%s2709_s20 + $0x8] sm:$0xff] %vm1074_vm0, %v1326_v61  ;;  %v1173_v16 = vsel %vm1159_vm13, %v1156_v0, %v1035_v19 }
 0x1f5   : > { %v972_v3 = vpop.permute.xlu1 %971 }
 0x1f6   : > { %v1124_v25 = vsel %vm1108_vm10, %v1107_v23, %v972_v3  ;;  %v1055_v30 = vpop.permute.xlu0 %1054 }
 0x1f7   : > { %v1141_v31 = vsel %vm1125_vm11, %v1124_v25, %v992_v21  ;;  %v1190_v28 = vsel %vm1176_vm14, %v1173_v16, %v1055_v30 }
 0x1f8   : > { %1867 = vmatprep.mubr.msk.bf16.mxu1 %vm1368_vm15, %v1190_v28  ;;  %v1158_v11 = vsel %vm1142_vm12, %v1141_v31, %v1009_v46 }
 0x1f9   : > { %v1175_v14 = vsel %vm1159_vm13, %v1158_v11, %v1037_v18  ;;  %v1057_v26 = vpop.permute.xlu1 %1056 }
 0x1fa   : > { %v1192_v32 = vsel %vm1176_vm14, %v1175_v14, %v1057_v26 }
 0x1fb   : > { %1868 = vmatmul.mubr.msk.bf16.gmra.mrb[20].mxu1 %vm1368_vm15, %v1192_v32 }
 0x1fc   : > { %v1839_v33 = vpop.f32.mrb[24].mxu0 }
 0x1fd   : > { %v1287_v34 = vadd.f32 %v1839_v33, %v2690_v51  ;;  %v1278_v29 = vpop.f32.mrb[25].mxu0 }
 0x1fe   : > { %v1279_v38 = vadd.f32 %v2690_v51, %v1278_v29  ;;  %v1840_v9 = vpop.f32.mrb[26].mxu0 }
 0x1ff   : > { %v1331_v39 = vmax.f32 %v1287_v34, 0.0  ;;  %v1290_v40 = vadd.f32 %v1840_v9, %v2690_v51  ;;  %v1281_v41 = vpop.f32.mrb[27].mxu0 }
 0x200   : > { %v1329_v37 = vmax.f32 %v1279_v38, 0.0  ;;  %v1282_v35 = vadd.f32 %v2690_v51, %v1281_v41 }
 0x201   : > { %1507 = vst.msk [vmem:[%s2709_s20 + $0x30] sm:$0xff] %vm1074_vm0, %v1331_v39  ;;  %v1332_v24 = vmax.f32 %v1290_v40, 0.0 }
 0x202   : > { %1505 = vst.msk [vmem:[%s2709_s20 + $0x20] sm:$0xff] %vm1074_vm0, %v1329_v37  ;;  %v1330_v42 = vmax.f32 %v1282_v35, 0.0 }
 0x203   : > { %1508 = vst.msk [vmem:[%s2709_s20 + $0x38] sm:$0xff] %vm1074_vm0, %v1332_v24 }
 0x204   : > { %1506 = vst.msk [vmem:[%s2709_s20 + $0x28] sm:$0xff] %vm1074_vm0, %v1330_v42  ;;  %v1843_v44 = vpop.f32.mrb[0].mxu1 }
 0x205   : > { %v1303_v36 = vadd.f32 %v1843_v44, %v2690_v51  ;;  %v1294_v45 = vpop.f32.mrb[1].mxu1 }
 0x206   : > { %v1295_v12 = vadd.f32 %v2690_v51, %v1294_v45  ;;  %v1844_v46 = vpop.f32.mrb[2].mxu1 }
 0x207   : > { %v1335_v47 = vmax.f32 %v1303_v36, 0.0  ;;  %v1306_v63 = vadd.f32 %v1844_v46, %v2690_v51  ;;  %v1297_v27 = vpop.f32.mrb[3].mxu1 }
 0x208   : > { %v1333_v48 = vmax.f32 %v1295_v12, 0.0  ;;  %v1298_v55 = vadd.f32 %v2690_v51, %v1297_v27 }
 0x209   : > { %1511 = vst.msk [vmem:[%s2709_s20 + $0x50] sm:$0xff] %vm1074_vm0, %v1335_v47  ;;  %v1336_v52 = vmax.f32 %v1306_v63, 0.0 }
 0x20a   : > { %1509 = vst.msk [vmem:[%s2709_s20 + $0x40] sm:$0xff] %vm1074_vm0, %v1333_v48  ;;  %v1334_v53 = vmax.f32 %v1298_v55, 0.0 }
 0x20b   : > { %1512 = vst.msk [vmem:[%s2709_s20 + $0x58] sm:$0xff] %vm1074_vm0, %v1336_v52 }
 0x20c   : > { %1510 = vst.msk [vmem:[%s2709_s20 + $0x48] sm:$0xff] %vm1074_vm0, %v1334_v53 }
 0x211   : > { %v1847_v56 = vpop.f32.mrb[4].mxu1 }
 0x212   : > { %v1319_v58 = vadd.f32 %v1847_v56, %v2690_v51  ;;  %v1310_v60 = vpop.f32.mrb[5].mxu1 }
 0x213   : > { %v1311_v1 = vadd.f32 %v2690_v51, %v1310_v60  ;;  %v1848_v49 = vpop.f32.mrb[6].mxu1 }
 0x214   : > { %v1339_v2 = vmax.f32 %v1319_v58, 0.0  ;;  %v1322_v4 = vadd.f32 %v1848_v49, %v2690_v51  ;;  %v1313_v5 = vpop.f32.mrb[7].mxu1 }
 0x215   : > { %v1337_v62 = vmax.f32 %v1311_v1, 0.0  ;;  %v1314_v7 = vadd.f32 %v2690_v51, %v1313_v5 }
 0x216   : > { %1515 = vst.msk [vmem:[%s2709_s20 + $0x70] sm:$0xff] %vm1074_vm0, %v1339_v2  ;;  %v1340_v21 = vmax.f32 %v1322_v4, 0.0 }
 0x217   : > { %1513 = vst.msk [vmem:[%s2709_s20 + $0x60] sm:$0xff] %vm1074_vm0, %v1337_v62  ;;  %v1338_v50 = vmax.f32 %v1314_v7, 0.0 }
 0x218   : > { %1516 = vst.msk [vmem:[%s2709_s20 + $0x78] sm:$0xff] %vm1074_vm0, %v1340_v21 }
 0x219   : > { %1514 = vst.msk [vmem:[%s2709_s20 + $0x68] sm:$0xff] %vm1074_vm0, %v1338_v50 }
 0x281   : > { %v1857_v57 = vpop.f32.mrb[8].mxu1 }
 0x282   : > { %v1431_v20 = vadd.f32 %v1857_v57, %v1753_v8  ;;  %v1422_v17 = vpop.f32.mrb[9].mxu1 }
 0x283   : > { %v1858_v54 = vpop.f32.mrb[10].mxu1  ;;  %v1423_v51 = vadd.f32 %v1753_v8, %v1422_v17 }
 0x284   : > { %v1487_v10 = vmax.f32 %v1431_v20, 0.0  ;;  %v1434_v13 = vadd.f32 %v1858_v54, %v1753_v8  ;;  %v1425_v43 = vpop.f32.mrb[11].mxu1 }
 0x285   : > { %v1426_v15 = vadd.f32 %v1753_v8, %v1425_v43  ;;  %v1485_v61 = vmax.f32 %v1423_v51, 0.0 }
 0x286   : > { %v1488_v59 = vmax.f32 %v1434_v13, 0.0  ;;  %1537 = vrot.lane.b32.xlu0 %v1487_v10, %s2069_s13 }
 0x287   : > { %v1486_v18 = vmax.f32 %v1426_v15, 0.0 }
 0x288   : > { %1539 = vrot.lane.b32.xlu1 %v1488_v59, %s2069_s13 }
 0x28a   : > { %1533 = vrot.lane.b32.xlu0 %v1485_v61, %s2069_s13 }
 0x28c   : > { %1535 = vrot.lane.b32.xlu1 %v1486_v18, %s2069_s13 }
 0x2a1   : > { %v1861_v19 = vpop.f32.mrb[12].mxu1 }
 0x2a2   : > { %v1447_v6 = vadd.f32 %v1861_v19, %v1753_v8  ;;  %v1438_v22 = vpop.f32.mrb[13].mxu1 }
 0x2a3   : > { %v1862_v23 = vpop.f32.mrb[14].mxu1  ;;  %v1439_v3 = vadd.f32 %v1753_v8, %v1438_v22 }
 0x2a4   : > { %v1491_v0 = vmax.f32 %v1447_v6, 0.0  ;;  %v1450_v16 = vadd.f32 %v1862_v23, %v1753_v8  ;;  %v1441_v25 = vpop.f32.mrb[15].mxu1 }
 0x2a5   : > { %v1442_v31 = vadd.f32 %v1753_v8, %v1441_v25  ;;  %v1489_v28 = vmax.f32 %v1439_v3, 0.0 }
 0x2a6   : > { %v1492_v30 = vmax.f32 %v1450_v16, 0.0  ;;  %1545 = vrot.lane.b32.xlu0 %v1491_v0, %s2069_s13 }
 0x2a7   : > { %v1490_v11 = vmax.f32 %v1442_v31, 0.0 }
 0x2a8   : > { %1547 = vrot.lane.b32.xlu1 %v1492_v30, %s2069_s13 }
 0x2aa   : > { %1541 = vrot.lane.b32.xlu0 %v1489_v28, %s2069_s13 }
 0x2ac   : > { %1543 = vrot.lane.b32.xlu1 %v1490_v11, %s2069_s13 }
 0x2c1   : > { %v1865_v14 = vpop.f32.mrb[16].mxu1 }
 0x2c2   : > { %v1463_v26 = vadd.f32 %v1865_v14, %v1753_v8  ;;  %v1454_v32 = vpop.f32.mrb[17].mxu1 }
 0x2c3   : > { %v1866_v33 = vpop.f32.mrb[18].mxu1  ;;  %v1455_v29 = vadd.f32 %v1753_v8, %v1454_v32 }
 0x2c4   : > { %v1495_v34 = vmax.f32 %v1463_v26, 0.0  ;;  %v1466_v38 = vadd.f32 %v1866_v33, %v1753_v8  ;;  %v1457_v9 = vpop.f32.mrb[19].mxu1 }
 0x2c5   : > { %v1458_v40 = vadd.f32 %v1753_v8, %v1457_v9  ;;  %v1493_v41 = vmax.f32 %v1455_v29, 0.0 }
 0x2c6   : > { %v1496_v39 = vmax.f32 %v1466_v38, 0.0  ;;  %1553 = vrot.lane.b32.xlu0 %v1495_v34, %s2069_s13 }
 0x2c7   : > { %v1494_v37 = vmax.f32 %v1458_v40, 0.0 }
 0x2c8   : > { %1555 = vrot.lane.b32.xlu1 %v1496_v39, %s2069_s13 }
 0x2ca   : > { %1549 = vrot.lane.b32.xlu0 %v1493_v41, %s2069_s13 }
 0x2cc   : > { %1551 = vrot.lane.b32.xlu1 %v1494_v37, %s2069_s13 }
 0x2ce   : > { %v1869_v35 = vpop.f32.mrb[20].mxu1 }
 0x2cf   : > { %v1470_v24 = vpop.f32.mrb[21].mxu1  ;;  %v1479_v45 = vadd.f32 %v1869_v35, %v1753_v8 }
 0x2d0   : > { %v1471_v42 = vadd.f32 %v1753_v8, %v1470_v24  ;;  %v1870_v44 = vpop.f32.mrb[22].mxu1 }
 0x2d1   : > { %v1473_v36 = vpop.f32.mrb[23].mxu1  ;;  %v1482_v47 = vadd.f32 %v1870_v44, %v1753_v8  ;;  %v1499_v27 = vmax.f32 %v1479_v45, 0.0 }
 0x2d2   : > { %v1497_v12 = vmax.f32 %v1471_v42, 0.0  ;;  %v1474_v46 = vadd.f32 %v1753_v8, %v1473_v36 }
 0x2d3   : > { %v1500_v48 = vmax.f32 %v1482_v47, 0.0 }
 0x2d4   : > { %v1498_v63 = vmax.f32 %v1474_v46, 0.0  ;;  %1557 = vrot.lane.b32.xlu0 %v1497_v12, %s2069_s13 }
 0x2d6   : > { %1559 = vrot.lane.b32.xlu1 %v1498_v63, %s2069_s13 }
 0x2d8   : > { %1561 = vrot.lane.b32.xlu0 %v1499_v27, %s2069_s13 }
 0x2da   : > { %1563 = vrot.lane.b32.xlu1 %v1500_v48, %s2069_s13 }
 0x2f8   : > { %v1538_v55 = vpop.permute.xlu0 %1537 }
 0x2f9   : > { %1584 = vst.msk [vmem:[%s2709_s20 + $0x10] sm:$0xff] %vm1581_vm1, %v1538_v55 }
 0x2fa   : > { %v1540_v52 = vpop.permute.xlu1 %1539 }
 0x2fb   : > { %1585 = vst.msk [vmem:[%s2709_s20 + $0x18] sm:$0xff] %vm1581_vm1, %v1540_v52 }
 0x2fc   : > { %v1534_v53 = vpop.permute.xlu0 %1533 }
 0x2fd   : > { %1582 = vst.msk [vmem:[%s2709_s20] sm:$0xff] %vm1581_vm1, %v1534_v53 }
 0x2fe   : > { %v1536_v56 = vpop.permute.xlu1 %1535 }
 0x2ff   : > { %1583 = vst.msk [vmem:[%s2709_s20 + $0x8] sm:$0xff] %vm1581_vm1, %v1536_v56 }
 0x318   : > { %v1546_v58 = vpop.permute.xlu0 %1545 }
 0x319   : > { %1588 = vst.msk [vmem:[%s2709_s20 + $0x30] sm:$0xff] %vm1581_vm1, %v1546_v58 }
 0x31a   : > { %v1548_v60 = vpop.permute.xlu1 %1547 }
 0x31b   : > { %1589 = vst.msk [vmem:[%s2709_s20 + $0x38] sm:$0xff] %vm1581_vm1, %v1548_v60 }
 0x31c   : > { %v1542_v1 = vpop.permute.xlu0 %1541 }
 0x31d   : > { %1586 = vst.msk [vmem:[%s2709_s20 + $0x20] sm:$0xff] %vm1581_vm1, %v1542_v1 }
 0x31e   : > { %v1544_v49 = vpop.permute.xlu1 %1543 }
 0x31f   : > { %1587 = vst.msk [vmem:[%s2709_s20 + $0x28] sm:$0xff] %vm1581_vm1, %v1544_v49 }
 0x338   : > { %v1554_v2 = vpop.permute.xlu0 %1553 }
 0x339   : > { %1592 = vst.msk [vmem:[%s2709_s20 + $0x50] sm:$0xff] %vm1581_vm1, %v1554_v2 }
 0x33a   : > { %v1556_v4 = vpop.permute.xlu1 %1555 }
 0x33b   : > { %1593 = vst.msk [vmem:[%s2709_s20 + $0x58] sm:$0xff] %vm1581_vm1, %v1556_v4 }
 0x33c   : > { %v1550_v5 = vpop.permute.xlu0 %1549 }
 0x33d   : > { %1590 = vst.msk [vmem:[%s2709_s20 + $0x40] sm:$0xff] %vm1581_vm1, %v1550_v5 }
 0x33e   : > { %v1552_v62 = vpop.permute.xlu1 %1551 }
 0x33f   : > { %1591 = vst.msk [vmem:[%s2709_s20 + $0x48] sm:$0xff] %vm1581_vm1, %v1552_v62 }
 0x346   : > { %v1558_v7 = vpop.permute.xlu0 %1557 }
 0x347   : > { %1594 = vst.msk [vmem:[%s2709_s20 + $0x60] sm:$0xff] %vm1581_vm1, %v1558_v7 }
 0x348   : > { %v1560_v21 = vpop.permute.xlu1 %1559 }
 0x349   : > { %1595 = vst.msk [vmem:[%s2709_s20 + $0x68] sm:$0xff] %vm1581_vm1, %v1560_v21 }
 0x34a   : > { %v1562_v50 = vpop.permute.xlu0 %1561 }
 0x34b   : > { %1596 = vst.msk [vmem:[%s2709_s20 + $0x70] sm:$0xff] %vm1581_vm1, %v1562_v50 }
 0x34c   : > { %v1564_v8 = vpop.permute.xlu1 %1563 }
 0x34d   : > { %1597 = vst.msk [vmem:[%s2709_s20 + $0x78] sm:$0xff] %vm1581_vm1, %v1564_v8 }
 0x34e   : > { %1984 = shalt.err (!%p1981_p9)
}
 0x34f   : > { %s1985_s23 = scalar_lea.hbm %s2829_s16, 2048  ;;  %s1989_s12 = scalar_lea.hbm %s2895_s7, 8192 }
 0x350   : > { %p1986_p10 = scmp.ne.s32.totalorder %s2829_s16, %s1985_s23  ;;  %p1990_p13 = scmp.lt.u32.totalorder %s2829_s16, %s2895_s7 }
 0x351   : > { %p1991_p0 = scmp.lt.u32.totalorder %s1989_s12, %s1985_s23  ;;  %p1993_p2 = scmp.lt.u32.totalorder %s1985_s23, %s2829_s16 }
 0x352   : > { %p1987_p11 = pnand %p1986_p10, %p2169_p3 }
 0x353   : > { %p1992_p1 = por %p1991_p0, %p1990_p13 }
 0x354   : > { %p1988_p12 = pneg %p1987_p11 }
 0x355   : > { %p1994_p4 = por %p1993_p2, %p1992_p1 }
 0x357   : > { %p1995_p5 = pnand %p1994_p4, %p1988_p12 }
 0x359   : > { %1998 = shalt.err (!%p1995_p5)
}
 0x35a   : > { %s2077_s28 = smov 128  }
 0x35b   : > { %1877 = dma.vmem_to_hbm [thread:$0]  (%p2169_p3), %s2822_s9, 2048, %s2829_s16, %s2835_s17, %s2077_s28, %s2077_s28, %s2069_s13  }
 0x35c PF: > { %p1883_p6 = scmp.ge.s32.totalorder %s2065_s8, 2  ;;  %s1630_s18 = sand.u32 1, %s2037_s24  }
 0x35d   : > { %s1631_s22 = scalar_lea.sflag [#allocation3], %s1630_s18 }
 0x35e   : > { %p1880_p7 = pnand %p1883_p6, %p2178_p8 }
 0x360   : > { %2032 = dma.done.wait (!%p1880_p7), %s1631_s22, 2048  }
 0x361   : > { %2034 = vsyncadd (!%p1880_p7), %s1631_s22, 4294965248  ;;  %s20_s8 = sadd.s32 1, %s2065_s8   ;;  %s2918_s14 = sld [smem:[#allocation5_spill]] }
 0x362   : > { %p17_p9 = scmp.ge.s32.totalorder %s20_s8, 6   ;;  %s2919_s13 = sld [smem:[#allocation6_spill]] }
 0x363   : > { %s2920_s24 = smov %s2041_s25  ;;  %s2921_s25 = smov %s2045_s26 }
 0x364   : > { %s2922_s26 = smov %s2187_s19  ;;  %s2923_s27 = smov %s2057_s29 }
 0x365   : > { %s2924_s28 = smov %s2061_s30  ;;  %19 = sbr.rel (!%p17_p9) target bundleno = 7 (0x7), region = 86 }
 0x367   : > { %s2925_s29 = smov %s2918_s14 }
 0x368   : > { %s2926_s30 = smov %s2919_s13 }
 0x36c   :  { %1636 = vsyncpa [#allocation3], 1 }
 0x36d   :  { %1638 = vsyncpa [#allocation3 + $0x1], 1 }

</bundles_post_ra>
